<compile_context>
chip_gen: v6e
topology: v6e:2x2x1
jax: 0.10.0
libtpu: 0.0.40
codegen_flags: <defaults>
</compile_context>

<pallas_src>
import numpy as np
import jax
import jax.numpy as jnp
from jax.experimental import pallas as pl
from jax.experimental.pallas import tpu as pltpu


# --------------------------- helpers ------------------------------------------

def _round_up(x, m):
    return ((x + m - 1) // m) * m


def _pad_axis(x, axis, new_size):
    pad = new_size - x.shape[axis]
    if pad == 0:
        return x
    widths = [(0, 0)] * x.ndim
    widths[axis] = (0, pad)
    return jnp.pad(x, widths)


def _pad_gate_cols(w, D, Dp):
    """(.., 4*D) -> (.., 4*Dp) with gate slab k starting at column k*Dp."""
    slabs = []
    for k in range(4):
        s = w[..., k * D:(k + 1) * D]
        slabs.append(_pad_axis(s, w.ndim - 1, Dp))
    return jnp.concatenate(slabs, axis=-1)


# --------------------------- Pallas kernels ------------------------------------

def _recurrent_kernel(declen_ref, emb_ref, h0_ref, c0_ref,
                      wih_ref, whh_ref, bg_ref, h_out_ref, h_sc, c_sc):
    """Time-chunked LSTMCell recurrence with the input projection fused in.

    Per grid step (one time chunk):
      gx_chunk = emb_chunk @ W_ih + b      (one batched bf16 MXU matmul)
      then T_CHUNK serial steps of h @ W_hh + gate math, carrying (h, c)
      across grid steps in f32 VMEM scratch.
    """
    tc = pl.program_id(0)

    @pl.when(tc == 0)
    def _():
        h_sc[...] = h0_ref[...]
        c_sc[...] = c0_ref[...]

    Bp, Dp = h0_ref.shape
    T_CHUNK = h_out_ref.shape[0]
    lens = declen_ref[...]                                   # (Bp, 1) i32
    t0 = tc * T_CHUNK

    # Fused input projection for the whole chunk (bf16 operands, f32 acc).
    gx = jnp.dot(emb_ref[...], wih_ref[...],
                 preferred_element_type=jnp.float32) + bg_ref[...]  # (T_CHUNK*Bp, 4Dp)

    h = h_sc[...]
    c = c_sc[...]
    for t in range(T_CHUNK):                                 # static, fully unrolled
        gates = gx[t * Bp:(t + 1) * Bp, :] + jnp.dot(
            h.astype(jnp.bfloat16), whh_ref[...],
            preferred_element_type=jnp.float32)
        # Gate slabs are 128-lane aligned (Dp is a multiple of 128).
        i_g = jax.nn.sigmoid(gates[:, 0 * Dp:1 * Dp])
        f_g = jax.nn.sigmoid(gates[:, 1 * Dp:2 * Dp])
        g_g = jnp.tanh(gates[:, 2 * Dp:3 * Dp])
        o_g = jax.nn.sigmoid(gates[:, 3 * Dp:4 * Dp])

        c_new = f_g * c + i_g * g_g
        h_new = o_g * jnp.tanh(c_new)
        h_out_ref[t] = h_new.astype(jnp.bfloat16)

        # PyTorch only advances the still-active prefix of the sorted batch.
        active = lens > (t0 + t)                             # (Bp, 1)
        h = jnp.where(active, h_new, h)
        c = jnp.where(active, c_new, c)

    h_sc[...] = h
    c_sc[...] = c


def _fc_proj_kernel(h_ref, act_ref, w_ref, b_ref, o_ref):
    """Deferred fc projection (bf16 x bf16 -> f32); active mask as a multiply."""
    preds = jnp.dot(h_ref[...], w_ref[...],
                    preferred_element_type=jnp.float32) + b_ref[...]
    o_ref[...] = preds * act_ref[...]


# --------------------------- Python wrapper -------------------------------------

def decoder_forward(params, encoder_out, encoded_captions, caption_lengths):
    """Mirror of Decoder.forward (eval mode)."""
    B = encoder_out.shape[0]
    E = encoder_out.shape[-1]
    enc = encoder_out.reshape(B, -1, E)                      # (B, S, E)

    cl = caption_lengths[:, 0]
    sort_ind = jnp.argsort(-cl)                              # stable descending
    cl_sorted = cl[sort_ind]
    enc = enc[sort_ind]
    caps_sorted = encoded_captions[sort_ind]

    emb = jnp.take(params['embedding'], caps_sorted, axis=0)  # (B, L, M)
    decode_lengths = cl_sorted - 1
    # TODO(synk): host readback for the static time extent; blocks jit tracing
    # of decoder_forward but matches the PyTorch data-dependent loop bound.
    T = int(np.max(np.asarray(caption_lengths)) - 1)

    D = params['w_hh_t'].shape[0]
    M = emb.shape[-1]
    V = params['fc_w_t'].shape[1]

    # Hardware-friendly padded sizes: sublanes (8) for batch, lanes (128) for
    # feature/vocab dims; gate slabs re-laid-out on 128-lane boundaries.
    T_CHUNK = 8
    Bp = _round_up(B, 8)
    Dp = _round_up(D, 128)
    Mp = _round_up(M, 128)
    Tp = _round_up(T, T_CHUNK)

    Vp128 = _round_up(V, 128)
    TV = min(512, Vp128)                                     # wide MXU tiles
    Vp = _round_up(Vp128, TV)

    R = Bp * Tp                                              # multiple of 64
    TR = next(c for c in (512, 256, 128, 64, 32, 16, 8) if R % c == 0)

    f32, bf16 = jnp.float32, jnp.bfloat16

    # ---- 1) init_hidden_state: tiny, plain XLA (no kernel launch) ----
    mean_enc = jnp.mean(enc.astype(f32), axis=1)             # (B, E)
    h0 = mean_enc @ params['init_h_w_t'] + params['init_h_b']
    c0 = mean_enc @ params['init_c_w_t'] + params['init_c_b']
    h0 = _pad_axis(_pad_axis(h0, 0, Bp), 1, Dp)              # (Bp, Dp) f32
    c0 = _pad_axis(_pad_axis(c0, 0, Bp), 1, Dp)

    # ---- pad / cast operands (zero padding keeps results exact) ----
    w_ih_p = _pad_gate_cols(_pad_axis(params['w_ih_t'], 0, Mp), D, Dp).astype(bf16)
    w_hh_p = _pad_gate_cols(_pad_axis(params['w_hh_t'], 0, Dp), D, Dp).astype(bf16)
    b_g_p = _pad_gate_cols(params['b_gates'], D, Dp).astype(f32)      # (1, 4Dp)

    fc_w_p = _pad_axis(_pad_axis(params['fc_w_t'], 0, Dp), 1, Vp).astype(bf16)
    fc_b_p = _pad_axis(params['fc_b'], 1, Vp).astype(f32)             # (1, Vp)

    emb_t = jnp.transpose(emb[:, :T, :], (1, 0, 2))          # (T, B, M)
    emb_t = _pad_axis(emb_t, 0, Tp)
    emb_t = _pad_axis(_pad_axis(emb_t, 1, Bp), 2, Mp)        # (Tp, Bp, Mp)
    emb_2d = emb_t.reshape(Tp * Bp, Mp).astype(bf16)         # t-major rows

    declen_p = _pad_axis(decode_lengths.astype(jnp.int32), 0, Bp)     # (Bp,)
    declen_col = declen_p.reshape(Bp, 1)

    # ---- 2) fused input projection + serial recurrence (time-chunked) ----
    H = pl.pallas_call(
        _recurrent_kernel,
        out_shape=jax.ShapeDtypeStruct((Tp, Bp, Dp), bf16),
        grid=(Tp // T_CHUNK,),
        in_specs=[
            pl.BlockSpec((Bp, 1), lambda tc: (0, 0)),                 # decode lens
            pl.BlockSpec((T_CHUNK * Bp, Mp), lambda tc: (tc, 0)),     # emb chunk
            pl.BlockSpec((Bp, Dp), lambda tc: (0, 0)),                # h0
            pl.BlockSpec((Bp, Dp), lambda tc: (0, 0)),                # c0
            pl.BlockSpec((Mp, 4 * Dp), lambda tc: (0, 0)),            # W_ih (bf16)
            pl.BlockSpec((Dp, 4 * Dp), lambda tc: (0, 0)),            # W_hh (bf16)
            pl.BlockSpec((1, 4 * Dp), lambda tc: (0, 0)),             # gate bias
        ],
        out_specs=pl.BlockSpec((T_CHUNK, Bp, Dp), lambda tc: (tc, 0, 0)),
        scratch_shapes=[pltpu.VMEM((Bp, Dp), f32),                    # h carry
                        pltpu.VMEM((Bp, Dp), f32)],                   # c carry
        compiler_params=pltpu.CompilerParams(
            dimension_semantics=("arbitrary",),
            vmem_limit_bytes=64 * 1024 * 1024),
    )(declen_col, emb_2d, h0, c0, w_ih_p, w_hh_p, b_g_p)
    # TODO(synk): for large Bp on v7x, shard the recurrence across the 2
    # TensorCores by batch (no win at tiny Bp, latency-bound per step).

    # ---- 3) deferred fc projection: row x vocab tiled, (b, t)-major output ----
    # Transpose the SMALL bf16 H tensor (not the V-wide predictions), so the
    # fc output is already (Bp, Tp, Vp) row-major — no HBM transpose at the end.
    H_bt = jnp.transpose(H, (1, 0, 2)).reshape(R, Dp)                 # (R, Dp) bf16

    t_idx = jnp.arange(Tp, dtype=jnp.int32)
    act = (t_idx[None, :] < declen_p[:, None]).astype(f32).reshape(R, 1)

    preds_p = pl.pallas_call(
        _fc_proj_kernel,
        out_shape=jax.ShapeDtypeStruct((R, Vp), f32),
        grid=(R // TR, Vp // TV),                  # vocab innermost: H tile DMA'd once
        in_specs=[
            pl.BlockSpec((TR, Dp), lambda r, v: (r, 0)),
            pl.BlockSpec((TR, 1), lambda r, v: (r, 0)),
            pl.BlockSpec((Dp, TV), lambda r, v: (0, v)),
            pl.BlockSpec((1, TV), lambda r, v: (0, v)),
        ],
        out_specs=pl.BlockSpec((TR, TV), lambda r, v: (r, v)),
        compiler_params=pltpu.CompilerParams(
            dimension_semantics=("parallel", "parallel"),
            vmem_limit_bytes=64 * 1024 * 1024),
    )(H_bt, act, fc_w_p, fc_b_p)

    predictions = preds_p.reshape(Bp, Tp, Vp)[:B, :T, :V]             # (B, T, V)
    return predictions, caps_sorted, decode_lengths, sort_ind


# --------------------------- numpy reference ------------------------------------

def _reference_numpy(params, encoder_out, encoded_captions, caption_lengths):
    enc = np.asarray(encoder_out, np.float64)
    caps = np.asarray(encoded_captions)
    cl = np.asarray(caption_lengths)[:, 0]
    B, S, E = enc.shape
    order = np.argsort(-cl, kind='stable')
    cl = cl[order]
    enc = enc[order]
    caps = caps[order]

    emb = np.asarray(params['embedding'], np.float64)[caps]           # (B, L, M)
    mean_enc = enc.mean(axis=1)
    h = mean_enc @ np.asarray(params['init_h_w_t'], np.float64) \
        + np.asarray(params['init_h_b'], np.float64)
    c = mean_enc @ np.asarray(params['init_c_w_t'], np.float64) \
        + np.asarray(params['init_c_b'], np.float64)

    dec_len = cl - 1
    T = int(dec_len.max())
    D = h.shape[1]
    V = params['fc_w_t'].shape[1]
    wih = np.asarray(params['w_ih_t'], np.float64)
    whh = np.asarray(params['w_hh_t'], np.float64)
    bg = np.asarray(params['b_gates'], np.float64)
    wfc = np.asarray(params['fc_w_t'], np.float64)
    bfc = np.asarray(params['fc_b'], np.float64)

    def sig(x):
        return 1.0 / (1.0 + np.exp(-x))

    preds = np.zeros((B, T, V))
    for t in range(T):
        bt = int((dec_len > t).sum())
        x = emb[:bt, t, :]
        gates = x @ wih + h[:bt] @ whh + bg
        i_g = sig(gates[:, :D])
        f_g = sig(gates[:, D:2 * D])
        g_g = np.tanh(gates[:, 2 * D:3 * D])
        o_g = sig(gates[:, 3 * D:4 * D])
        c = f_g * c[:bt] + i_g * g_g
        h = o_g * np.tanh(c)
        preds[:bt, t, :] = h @ wfc + bfc
    return preds


# --------------------------- main -------------------------------------------------

if __name__ == "__main__":
    # Small, module-consistent shapes (deliberately NOT lane/sublane aligned so
    # the padding path in the wrapper is exercised and checked).
    B, S, E, M, D, V, L = 4, 8, 32, 32, 32, 40, 8   # batch, enc-seq, enc_dim,
                                                    # embed_dim, decoder_dim,
                                                    # vocab, caption length
    key = jax.random.PRNGKey(0)
    ks = jax.random.split(key, 12)

    def uni(k, shape, a):
        return jax.random.uniform(k, shape, jnp.float32, -a, a)

    s_lstm = 1.0 / np.sqrt(D)
    s_lin = 1.0 / np.sqrt(E)
    params = {
        # embedding stands in for ImageBind text embeddings (synthetic).
        'embedding':  jax.random.normal(ks[0], (V, M), jnp.float32),
        'w_ih_t':     uni(ks[1], (M, 4 * D), s_lstm),
        'w_hh_t':     uni(ks[2], (D, 4 * D), s_lstm),
        'b_gates':    uni(ks[3], (1, 4 * D), s_lstm) + uni(ks[4], (1, 4 * D), s_lstm),
        'init_h_w_t': uni(ks[5], (E, D), s_lin),
        'init_h_b':   uni(ks[6], (1, D), s_lin),
        'init_c_w_t': uni(ks[7], (E, D), s_lin),
        'init_c_b':   uni(ks[8], (1, D), s_lin),
        'fc_w_t':     uni(ks[9], (D, V), 0.1),         # fc.weight ~ U(-0.1, 0.1)
        'fc_b':       jnp.zeros((1, V), jnp.float32),  # fc.bias = 0
    }

    encoder_out = jax.random.normal(ks[10], (B, S, E), jnp.float32)
    encoded_captions = jax.random.randint(ks[11], (B, L), 0, V, jnp.int32)
    caption_lengths = jnp.array([[5], [8], [3], [7]], jnp.int32)   # distinct

    preds, caps_sorted, dec_lens, sort_ind = decoder_forward(
        params, encoder_out, encoded_captions, caption_lengths)
    preds = jax.block_until_ready(preds)

    ref = _reference_numpy(params, encoder_out, encoded_captions, caption_lengths)
    # Tolerance sized for bf16 MXU operands (f32 accumulation) over a T-step
    # serial recurrence; masked positions are exactly zero in both.
    np.testing.assert_allclose(np.asarray(preds), ref, atol=2e-2, rtol=2e-2)
    print("KERNEL_OK")
</pallas_src>

<mosaic_0001>
module attributes {stable_mosaic.version = 11 : i64} {
  func.func @_recurrent_kernel(%arg0: i32, %arg1: memref<8x1xi32, #tpu.memory_space<vmem>>, %arg2: memref<64x128xbf16, #tpu.memory_space<vmem>>, %arg3: memref<8x128xf32, #tpu.memory_space<vmem>>, %arg4: memref<8x128xf32, #tpu.memory_space<vmem>>, %arg5: memref<128x512xbf16, #tpu.memory_space<vmem>>, %arg6: memref<128x512xbf16, #tpu.memory_space<vmem>>, %arg7: memref<1x512xf32, #tpu.memory_space<vmem>>, %arg8: memref<8x8x128xbf16, #tpu.memory_space<vmem>>, %arg9: memref<8x128xf32, #tpu.memory_space<vmem>>, %arg10: memref<8x128xf32, #tpu.memory_space<vmem>>) attributes {dimension_semantics = [#tpu.dimension_semantics<arbitrary>], iteration_bounds = array<i64: 1>, scalar_prefetch = 0 : i64, scratch_operands = 2 : i64, tpu.core_type = #tpu.core_type<tc>, window_params = [{pipeline_mode = #tpu.pipeline_mode<synchronous>, transform_indices = @transform_0, window_bounds = array<i64: 8, 1>}, {transform_indices = @transform_1, window_bounds = array<i64: 64, 128>}, {pipeline_mode = #tpu.pipeline_mode<synchronous>, transform_indices = @transform_2, window_bounds = array<i64: 8, 128>}, {pipeline_mode = #tpu.pipeline_mode<synchronous>, transform_indices = @transform_3, window_bounds = array<i64: 8, 128>}, {pipeline_mode = #tpu.pipeline_mode<synchronous>, transform_indices = @transform_4, window_bounds = array<i64: 128, 512>}, {pipeline_mode = #tpu.pipeline_mode<synchronous>, transform_indices = @transform_5, window_bounds = array<i64: 128, 512>}, {pipeline_mode = #tpu.pipeline_mode<synchronous>, transform_indices = @transform_6, window_bounds = array<i64: 1, 512>}, {transform_indices = @transform_7, window_bounds = array<i64: 8, 8, 128>}]} {
    %c0_i32 = arith.constant 0 : i32
    %0 = arith.cmpi eq, %arg0, %c0_i32 : i32
    %1 = arith.extui %0 : i1 to i32
    %c0_i32_0 = arith.constant 0 : i32
    %2 = arith.cmpi ne, %1, %c0_i32_0 : i32
    scf.if %2 {
      %c0_82 = arith.constant 0 : index
      %c0_83 = arith.constant 0 : index
      %359 = vector.load %arg3[%c0_82, %c0_83] : memref<8x128xf32, #tpu.memory_space<vmem>>, vector<8x128xf32>
      %c0_84 = arith.constant 0 : index
      %c0_85 = arith.constant 0 : index
      %360 = vector.load %arg9[%c0_84, %c0_85] : memref<8x128xf32, #tpu.memory_space<vmem>>, vector<8x128xf32>
      tpu.vector_store %arg9[%c0_84, %c0_85], %359 {strides = array<i32>} : memref<8x128xf32, #tpu.memory_space<vmem>>, vector<8x128xf32>,
      %c0_86 = arith.constant 0 : index
      %c0_87 = arith.constant 0 : index
      %361 = vector.load %arg4[%c0_86, %c0_87] : memref<8x128xf32, #tpu.memory_space<vmem>>, vector<8x128xf32>
      %c0_88 = arith.constant 0 : index
      %c0_89 = arith.constant 0 : index
      %362 = vector.load %arg10[%c0_88, %c0_89] : memref<8x128xf32, #tpu.memory_space<vmem>>, vector<8x128xf32>
      tpu.vector_store %arg10[%c0_88, %c0_89], %361 {strides = array<i32>} : memref<8x128xf32, #tpu.memory_space<vmem>>, vector<8x128xf32>,
    } else {
    }
    %c0 = arith.constant 0 : index
    %c0_1 = arith.constant 0 : index
    %3 = vector.load %arg1[%c0, %c0_1] : memref<8x1xi32, #tpu.memory_space<vmem>>, vector<8x1xi32>
    %c8_i32 = arith.constant 8 : i32
    %4 = arith.muli %arg0, %c8_i32 : i32
    %c0_2 = arith.constant 0 : index
    %c0_3 = arith.constant 0 : index
    %5 = vector.load %arg2[%c0_2, %c0_3] : memref<64x128xbf16, #tpu.memory_space<vmem>>, vector<64x128xbf16>
    %c0_4 = arith.constant 0 : index
    %c0_5 = arith.constant 0 : index
    %6 = vector.load %arg5[%c0_4, %c0_5] : memref<128x512xbf16, #tpu.memory_space<vmem>>, vector<128x512xbf16>
    %cst = arith.constant dense<0.000000e+00> : vector<64x512xf32>
    %7 = tpu.matmul %5, %6, %cst {dimension_numbers = #tpu.dot_dimension_numbers<[1], [0], [0], [1], [0, 0, 1, 1], [], []>} : vector<64x128xbf16>, vector<128x512xbf16>, vector<64x512xf32> -> vector<64x512xf32>
    %c0_6 = arith.constant 0 : index
    %c0_7 = arith.constant 0 : index
    %8 = vector.load %arg7[%c0_6, %c0_7] : memref<1x512xf32, #tpu.memory_space<vmem>>, vector<1x512xf32>
    %9 = vector.broadcast %8 : vector<1x512xf32> to vector<64x512xf32>
    %10 = arith.addf %7, %9 : vector<64x512xf32>
    %c0_8 = arith.constant 0 : index
    %c0_9 = arith.constant 0 : index
    %11 = vector.load %arg9[%c0_8, %c0_9] : memref<8x128xf32, #tpu.memory_space<vmem>>, vector<8x128xf32>
    %c0_10 = arith.constant 0 : index
    %c0_11 = arith.constant 0 : index
    %12 = vector.load %arg10[%c0_10, %c0_11] : memref<8x128xf32, #tpu.memory_space<vmem>>, vector<8x128xf32>
    %13 = vector.extract_strided_slice %10 {offsets = [0, 0], sizes = [8, 512], strides = [1, 1]} : vector<64x512xf32> to vector<8x512xf32>
    %14 = arith.truncf %11 : vector<8x128xf32> to vector<8x128xbf16>
    %c0_12 = arith.constant 0 : index
    %c0_13 = arith.constant 0 : index
    %15 = vector.load %arg6[%c0_12, %c0_13] : memref<128x512xbf16, #tpu.memory_space<vmem>>, vector<128x512xbf16>
    %cst_14 = arith.constant dense<0.000000e+00> : vector<8x512xf32>
    %16 = tpu.matmul %14, %15, %cst_14 {dimension_numbers = #tpu.dot_dimension_numbers<[1], [0], [0], [1], [0, 0, 1, 1], [], []>} : vector<8x128xbf16>, vector<128x512xbf16>, vector<8x512xf32> -> vector<8x512xf32>
    %17 = arith.addf %13, %16 : vector<8x512xf32>
    %18 = vector.extract_strided_slice %17 {offsets = [0, 0], sizes = [8, 128], strides = [1, 1]} : vector<8x512xf32> to vector<8x128xf32>
    %19 = arith.negf %18 : vector<8x128xf32>
    %20 = math.exp %19 : vector<8x128xf32>
    %cst_15 = arith.constant 1.000000e+00 : f32
    %21 = vector.broadcast %cst_15 : f32 to vector<8x128xf32>
    %22 = arith.addf %21, %20 : vector<8x128xf32>
    %23 = arith.divf %21, %22 : vector<8x128xf32>
    %24 = vector.extract_strided_slice %17 {offsets = [0, 128], sizes = [8, 128], strides = [1, 1]} : vector<8x512xf32> to vector<8x128xf32>
    %25 = arith.negf %24 : vector<8x128xf32>
    %26 = math.exp %25 : vector<8x128xf32>
    %cst_16 = arith.constant 1.000000e+00 : f32
    %27 = vector.broadcast %cst_16 : f32 to vector<8x128xf32>
    %28 = arith.addf %27, %26 : vector<8x128xf32>
    %29 = arith.divf %27, %28 : vector<8x128xf32>
    %30 = vector.extract_strided_slice %17 {offsets = [0, 256], sizes = [8, 128], strides = [1, 1]} : vector<8x512xf32> to vector<8x128xf32>
    %31 = math.tanh %30 : vector<8x128xf32>
    %32 = vector.extract_strided_slice %17 {offsets = [0, 384], sizes = [8, 128], strides = [1, 1]} : vector<8x512xf32> to vector<8x128xf32>
    %33 = arith.negf %32 : vector<8x128xf32>
    %34 = math.exp %33 : vector<8x128xf32>
    %cst_17 = arith.constant 1.000000e+00 : f32
    %35 = vector.broadcast %cst_17 : f32 to vector<8x128xf32>
    %36 = arith.addf %35, %34 : vector<8x128xf32>
    %37 = arith.divf %35, %36 : vector<8x128xf32>
    %38 = arith.mulf %29, %12 : vector<8x128xf32>
    %39 = arith.mulf %23, %31 : vector<8x128xf32>
    %40 = arith.addf %38, %39 : vector<8x128xf32>
    %41 = math.tanh %40 : vector<8x128xf32>
    %42 = arith.mulf %37, %41 : vector<8x128xf32>
    %43 = arith.truncf %42 : vector<8x128xf32> to vector<8x128xbf16>
    %c0_18 = arith.constant 0 : index
    %c0_19 = arith.constant 0 : index
    %c0_20 = arith.constant 0 : index
    %44 = vector.load %arg8[%c0_18, %c0_19, %c0_20] : memref<8x8x128xbf16, #tpu.memory_space<vmem>>, vector<1x8x128xbf16>
    %45 = vector.shape_cast %44 : vector<1x8x128xbf16> to vector<8x128xbf16>
    %46 = vector.shape_cast %43 : vector<8x128xbf16> to vector<1x8x128xbf16>
    tpu.vector_store %arg8[%c0_18, %c0_19, %c0_20], %46 {strides = array<i32>} : memref<8x8x128xbf16, #tpu.memory_space<vmem>>, vector<1x8x128xbf16>,
    %c0_i32_21 = arith.constant 0 : i32
    %47 = arith.addi %4, %c0_i32_21 : i32
    %48 = vector.broadcast %47 : i32 to vector<8x1xi32>
    %49 = arith.cmpi sgt, %3, %48 : vector<8x1xi32>
    %50 = vector.shape_cast %49 : vector<8x1xi1> to vector<8x1xi1>
    %51 = vector.broadcast %50 : vector<8x1xi1> to vector<8x128xi1>
    %52 = arith.select %51, %42, %11 : vector<8x128xi1>, vector<8x128xf32>
    %53 = vector.shape_cast %49 : vector<8x1xi1> to vector<8x1xi1>
    %54 = vector.broadcast %53 : vector<8x1xi1> to vector<8x128xi1>
    %55 = arith.select %54, %40, %12 : vector<8x128xi1>, vector<8x128xf32>
    %56 = vector.extract_strided_slice %10 {offsets = [8, 0], sizes = [8, 512], strides = [1, 1]} : vector<64x512xf32> to vector<8x512xf32>
    %57 = arith.truncf %52 : vector<8x128xf32> to vector<8x128xbf16>
    %c0_22 = arith.constant 0 : index
    %c0_23 = arith.constant 0 : index
    %58 = vector.load %arg6[%c0_22, %c0_23] : memref<128x512xbf16, #tpu.memory_space<vmem>>, vector<128x512xbf16>
    %cst_24 = arith.constant dense<0.000000e+00> : vector<8x512xf32>
    %59 = tpu.matmul %57, %58, %cst_24 {dimension_numbers = #tpu.dot_dimension_numbers<[1], [0], [0], [1], [0, 0, 1, 1], [], []>} : vector<8x128xbf16>, vector<128x512xbf16>, vector<8x512xf32> -> vector<8x512xf32>
    %60 = arith.addf %56, %59 : vector<8x512xf32>
    %61 = vector.extract_strided_slice %60 {offsets = [0, 0], sizes = [8, 128], strides = [1, 1]} : vector<8x512xf32> to vector<8x128xf32>
    %62 = arith.negf %61 : vector<8x128xf32>
    %63 = math.exp %62 : vector<8x128xf32>
    %cst_25 = arith.constant 1.000000e+00 : f32
    %64 = vector.broadcast %cst_25 : f32 to vector<8x128xf32>
    %65 = arith.addf %64, %63 : vector<8x128xf32>
    %66 = arith.divf %64, %65 : vector<8x128xf32>
    %67 = vector.extract_strided_slice %60 {offsets = [0, 128], sizes = [8, 128], strides = [1, 1]} : vector<8x512xf32> to vector<8x128xf32>
    %68 = arith.negf %67 : vector<8x128xf32>
    %69 = math.exp %68 : vector<8x128xf32>
    %cst_26 = arith.constant 1.000000e+00 : f32
    %70 = vector.broadcast %cst_26 : f32 to vector<8x128xf32>
    %71 = arith.addf %70, %69 : vector<8x128xf32>
    %72 = arith.divf %70, %71 : vector<8x128xf32>
    %73 = vector.extract_strided_slice %60 {offsets = [0, 256], sizes = [8, 128], strides = [1, 1]} : vector<8x512xf32> to vector<8x128xf32>
    %74 = math.tanh %73 : vector<8x128xf32>
    %75 = vector.extract_strided_slice %60 {offsets = [0, 384], sizes = [8, 128], strides = [1, 1]} : vector<8x512xf32> to vector<8x128xf32>
    %76 = arith.negf %75 : vector<8x128xf32>
    %77 = math.exp %76 : vector<8x128xf32>
    %cst_27 = arith.constant 1.000000e+00 : f32
    %78 = vector.broadcast %cst_27 : f32 to vector<8x128xf32>
    %79 = arith.addf %78, %77 : vector<8x128xf32>
    %80 = arith.divf %78, %79 : vector<8x128xf32>
    %81 = arith.mulf %72, %55 : vector<8x128xf32>
    %82 = arith.mulf %66, %74 : vector<8x128xf32>
    %83 = arith.addf %81, %82 : vector<8x128xf32>
    %84 = math.tanh %83 : vector<8x128xf32>
    %85 = arith.mulf %80, %84 : vector<8x128xf32>
    %86 = arith.truncf %85 : vector<8x128xf32> to vector<8x128xbf16>
    %c1 = arith.constant 1 : index
    %c0_28 = arith.constant 0 : index
    %c0_29 = arith.constant 0 : index
    %87 = vector.load %arg8[%c1, %c0_28, %c0_29] : memref<8x8x128xbf16, #tpu.memory_space<vmem>>, vector<1x8x128xbf16>
    %88 = vector.shape_cast %87 : vector<1x8x128xbf16> to vector<8x128xbf16>
    %89 = vector.shape_cast %86 : vector<8x128xbf16> to vector<1x8x128xbf16>
    tpu.vector_store %arg8[%c1, %c0_28, %c0_29], %89 {strides = array<i32>} : memref<8x8x128xbf16, #tpu.memory_space<vmem>>, vector<1x8x128xbf16>,
    %c1_i32 = arith.constant 1 : i32
    %90 = arith.addi %4, %c1_i32 : i32
    %91 = vector.broadcast %90 : i32 to vector<8x1xi32>
    %92 = arith.cmpi sgt, %3, %91 : vector<8x1xi32>
    %93 = vector.shape_cast %92 : vector<8x1xi1> to vector<8x1xi1>
    %94 = vector.broadcast %93 : vector<8x1xi1> to vector<8x128xi1>
    %95 = arith.select %94, %85, %52 : vector<8x128xi1>, vector<8x128xf32>
    %96 = vector.shape_cast %92 : vector<8x1xi1> to vector<8x1xi1>
    %97 = vector.broadcast %96 : vector<8x1xi1> to vector<8x128xi1>
    %98 = arith.select %97, %83, %55 : vector<8x128xi1>, vector<8x128xf32>
    %99 = vector.extract_strided_slice %10 {offsets = [16, 0], sizes = [8, 512], strides = [1, 1]} : vector<64x512xf32> to vector<8x512xf32>
    %100 = arith.truncf %95 : vector<8x128xf32> to vector<8x128xbf16>
    %c0_30 = arith.constant 0 : index
    %c0_31 = arith.constant 0 : index
    %101 = vector.load %arg6[%c0_30, %c0_31] : memref<128x512xbf16, #tpu.memory_space<vmem>>, vector<128x512xbf16>
    %cst_32 = arith.constant dense<0.000000e+00> : vector<8x512xf32>
    %102 = tpu.matmul %100, %101, %cst_32 {dimension_numbers = #tpu.dot_dimension_numbers<[1], [0], [0], [1], [0, 0, 1, 1], [], []>} : vector<8x128xbf16>, vector<128x512xbf16>, vector<8x512xf32> -> vector<8x512xf32>
    %103 = arith.addf %99, %102 : vector<8x512xf32>
    %104 = vector.extract_strided_slice %103 {offsets = [0, 0], sizes = [8, 128], strides = [1, 1]} : vector<8x512xf32> to vector<8x128xf32>
    %105 = arith.negf %104 : vector<8x128xf32>
    %106 = math.exp %105 : vector<8x128xf32>
    %cst_33 = arith.constant 1.000000e+00 : f32
    %107 = vector.broadcast %cst_33 : f32 to vector<8x128xf32>
    %108 = arith.addf %107, %106 : vector<8x128xf32>
    %109 = arith.divf %107, %108 : vector<8x128xf32>
    %110 = vector.extract_strided_slice %103 {offsets = [0, 128], sizes = [8, 128], strides = [1, 1]} : vector<8x512xf32> to vector<8x128xf32>
    %111 = arith.negf %110 : vector<8x128xf32>
    %112 = math.exp %111 : vector<8x128xf32>
    %cst_34 = arith.constant 1.000000e+00 : f32
    %113 = vector.broadcast %cst_34 : f32 to vector<8x128xf32>
    %114 = arith.addf %113, %112 : vector<8x128xf32>
    %115 = arith.divf %113, %114 : vector<8x128xf32>
    %116 = vector.extract_strided_slice %103 {offsets = [0, 256], sizes = [8, 128], strides = [1, 1]} : vector<8x512xf32> to vector<8x128xf32>
    %117 = math.tanh %116 : vector<8x128xf32>
    %118 = vector.extract_strided_slice %103 {offsets = [0, 384], sizes = [8, 128], strides = [1, 1]} : vector<8x512xf32> to vector<8x128xf32>
    %119 = arith.negf %118 : vector<8x128xf32>
    %120 = math.exp %119 : vector<8x128xf32>
    %cst_35 = arith.constant 1.000000e+00 : f32
    %121 = vector.broadcast %cst_35 : f32 to vector<8x128xf32>
    %122 = arith.addf %121, %120 : vector<8x128xf32>
    %123 = arith.divf %121, %122 : vector<8x128xf32>
    %124 = arith.mulf %115, %98 : vector<8x128xf32>
    %125 = arith.mulf %109, %117 : vector<8x128xf32>
    %126 = arith.addf %124, %125 : vector<8x128xf32>
    %127 = math.tanh %126 : vector<8x128xf32>
    %128 = arith.mulf %123, %127 : vector<8x128xf32>
    %129 = arith.truncf %128 : vector<8x128xf32> to vector<8x128xbf16>
    %c2 = arith.constant 2 : index
    %c0_36 = arith.constant 0 : index
    %c0_37 = arith.constant 0 : index
    %130 = vector.load %arg8[%c2, %c0_36, %c0_37] : memref<8x8x128xbf16, #tpu.memory_space<vmem>>, vector<1x8x128xbf16>
    %131 = vector.shape_cast %130 : vector<1x8x128xbf16> to vector<8x128xbf16>
    %132 = vector.shape_cast %129 : vector<8x128xbf16> to vector<1x8x128xbf16>
    tpu.vector_store %arg8[%c2, %c0_36, %c0_37], %132 {strides = array<i32>} : memref<8x8x128xbf16, #tpu.memory_space<vmem>>, vector<1x8x128xbf16>,
    %c2_i32 = arith.constant 2 : i32
    %133 = arith.addi %4, %c2_i32 : i32
    %134 = vector.broadcast %133 : i32 to vector<8x1xi32>
    %135 = arith.cmpi sgt, %3, %134 : vector<8x1xi32>
    %136 = vector.shape_cast %135 : vector<8x1xi1> to vector<8x1xi1>
    %137 = vector.broadcast %136 : vector<8x1xi1> to vector<8x128xi1>
    %138 = arith.select %137, %128, %95 : vector<8x128xi1>, vector<8x128xf32>
    %139 = vector.shape_cast %135 : vector<8x1xi1> to vector<8x1xi1>
    %140 = vector.broadcast %139 : vector<8x1xi1> to vector<8x128xi1>
    %141 = arith.select %140, %126, %98 : vector<8x128xi1>, vector<8x128xf32>
    %142 = vector.extract_strided_slice %10 {offsets = [24, 0], sizes = [8, 512], strides = [1, 1]} : vector<64x512xf32> to vector<8x512xf32>
    %143 = arith.truncf %138 : vector<8x128xf32> to vector<8x128xbf16>
    %c0_38 = arith.constant 0 : index
    %c0_39 = arith.constant 0 : index
    %144 = vector.load %arg6[%c0_38, %c0_39] : memref<128x512xbf16, #tpu.memory_space<vmem>>, vector<128x512xbf16>
    %cst_40 = arith.constant dense<0.000000e+00> : vector<8x512xf32>
    %145 = tpu.matmul %143, %144, %cst_40 {dimension_numbers = #tpu.dot_dimension_numbers<[1], [0], [0], [1], [0, 0, 1, 1], [], []>} : vector<8x128xbf16>, vector<128x512xbf16>, vector<8x512xf32> -> vector<8x512xf32>
    %146 = arith.addf %142, %145 : vector<8x512xf32>
    %147 = vector.extract_strided_slice %146 {offsets = [0, 0], sizes = [8, 128], strides = [1, 1]} : vector<8x512xf32> to vector<8x128xf32>
    %148 = arith.negf %147 : vector<8x128xf32>
    %149 = math.exp %148 : vector<8x128xf32>
    %cst_41 = arith.constant 1.000000e+00 : f32
    %150 = vector.broadcast %cst_41 : f32 to vector<8x128xf32>
    %151 = arith.addf %150, %149 : vector<8x128xf32>
    %152 = arith.divf %150, %151 : vector<8x128xf32>
    %153 = vector.extract_strided_slice %146 {offsets = [0, 128], sizes = [8, 128], strides = [1, 1]} : vector<8x512xf32> to vector<8x128xf32>
    %154 = arith.negf %153 : vector<8x128xf32>
    %155 = math.exp %154 : vector<8x128xf32>
    %cst_42 = arith.constant 1.000000e+00 : f32
    %156 = vector.broadcast %cst_42 : f32 to vector<8x128xf32>
    %157 = arith.addf %156, %155 : vector<8x128xf32>
    %158 = arith.divf %156, %157 : vector<8x128xf32>
    %159 = vector.extract_strided_slice %146 {offsets = [0, 256], sizes = [8, 128], strides = [1, 1]} : vector<8x512xf32> to vector<8x128xf32>
    %160 = math.tanh %159 : vector<8x128xf32>
    %161 = vector.extract_strided_slice %146 {offsets = [0, 384], sizes = [8, 128], strides = [1, 1]} : vector<8x512xf32> to vector<8x128xf32>
    %162 = arith.negf %161 : vector<8x128xf32>
    %163 = math.exp %162 : vector<8x128xf32>
    %cst_43 = arith.constant 1.000000e+00 : f32
    %164 = vector.broadcast %cst_43 : f32 to vector<8x128xf32>
    %165 = arith.addf %164, %163 : vector<8x128xf32>
    %166 = arith.divf %164, %165 : vector<8x128xf32>
    %167 = arith.mulf %158, %141 : vector<8x128xf32>
    %168 = arith.mulf %152, %160 : vector<8x128xf32>
    %169 = arith.addf %167, %168 : vector<8x128xf32>
    %170 = math.tanh %169 : vector<8x128xf32>
    %171 = arith.mulf %166, %170 : vector<8x128xf32>
    %172 = arith.truncf %171 : vector<8x128xf32> to vector<8x128xbf16>
    %c3 = arith.constant 3 : index
    %c0_44 = arith.constant 0 : index
    %c0_45 = arith.constant 0 : index
    %173 = vector.load %arg8[%c3, %c0_44, %c0_45] : memref<8x8x128xbf16, #tpu.memory_space<vmem>>, vector<1x8x128xbf16>
    %174 = vector.shape_cast %173 : vector<1x8x128xbf16> to vector<8x128xbf16>
    %175 = vector.shape_cast %172 : vector<8x128xbf16> to vector<1x8x128xbf16>
    tpu.vector_store %arg8[%c3, %c0_44, %c0_45], %175 {strides = array<i32>} : memref<8x8x128xbf16, #tpu.memory_space<vmem>>, vector<1x8x128xbf16>,
    %c3_i32 = arith.constant 3 : i32
    %176 = arith.addi %4, %c3_i32 : i32
    %177 = vector.broadcast %176 : i32 to vector<8x1xi32>
    %178 = arith.cmpi sgt, %3, %177 : vector<8x1xi32>
    %179 = vector.shape_cast %178 : vector<8x1xi1> to vector<8x1xi1>
    %180 = vector.broadcast %179 : vector<8x1xi1> to vector<8x128xi1>
    %181 = arith.select %180, %171, %138 : vector<8x128xi1>, vector<8x128xf32>
    %182 = vector.shape_cast %178 : vector<8x1xi1> to vector<8x1xi1>
    %183 = vector.broadcast %182 : vector<8x1xi1> to vector<8x128xi1>
    %184 = arith.select %183, %169, %141 : vector<8x128xi1>, vector<8x128xf32>
    %185 = vector.extract_strided_slice %10 {offsets = [32, 0], sizes = [8, 512], strides = [1, 1]} : vector<64x512xf32> to vector<8x512xf32>
    %186 = arith.truncf %181 : vector<8x128xf32> to vector<8x128xbf16>
    %c0_46 = arith.constant 0 : index
    %c0_47 = arith.constant 0 : index
    %187 = vector.load %arg6[%c0_46, %c0_47] : memref<128x512xbf16, #tpu.memory_space<vmem>>, vector<128x512xbf16>
    %cst_48 = arith.constant dense<0.000000e+00> : vector<8x512xf32>
    %188 = tpu.matmul %186, %187, %cst_48 {dimension_numbers = #tpu.dot_dimension_numbers<[1], [0], [0], [1], [0, 0, 1, 1], [], []>} : vector<8x128xbf16>, vector<128x512xbf16>, vector<8x512xf32> -> vector<8x512xf32>
    %189 = arith.addf %185, %188 : vector<8x512xf32>
    %190 = vector.extract_strided_slice %189 {offsets = [0, 0], sizes = [8, 128], strides = [1, 1]} : vector<8x512xf32> to vector<8x128xf32>
    %191 = arith.negf %190 : vector<8x128xf32>
    %192 = math.exp %191 : vector<8x128xf32>
    %cst_49 = arith.constant 1.000000e+00 : f32
    %193 = vector.broadcast %cst_49 : f32 to vector<8x128xf32>
    %194 = arith.addf %193, %192 : vector<8x128xf32>
    %195 = arith.divf %193, %194 : vector<8x128xf32>
    %196 = vector.extract_strided_slice %189 {offsets = [0, 128], sizes = [8, 128], strides = [1, 1]} : vector<8x512xf32> to vector<8x128xf32>
    %197 = arith.negf %196 : vector<8x128xf32>
    %198 = math.exp %197 : vector<8x128xf32>
    %cst_50 = arith.constant 1.000000e+00 : f32
    %199 = vector.broadcast %cst_50 : f32 to vector<8x128xf32>
    %200 = arith.addf %199, %198 : vector<8x128xf32>
    %201 = arith.divf %199, %200 : vector<8x128xf32>
    %202 = vector.extract_strided_slice %189 {offsets = [0, 256], sizes = [8, 128], strides = [1, 1]} : vector<8x512xf32> to vector<8x128xf32>
    %203 = math.tanh %202 : vector<8x128xf32>
    %204 = vector.extract_strided_slice %189 {offsets = [0, 384], sizes = [8, 128], strides = [1, 1]} : vector<8x512xf32> to vector<8x128xf32>
    %205 = arith.negf %204 : vector<8x128xf32>
    %206 = math.exp %205 : vector<8x128xf32>
    %cst_51 = arith.constant 1.000000e+00 : f32
    %207 = vector.broadcast %cst_51 : f32 to vector<8x128xf32>
    %208 = arith.addf %207, %206 : vector<8x128xf32>
    %209 = arith.divf %207, %208 : vector<8x128xf32>
    %210 = arith.mulf %201, %184 : vector<8x128xf32>
    %211 = arith.mulf %195, %203 : vector<8x128xf32>
    %212 = arith.addf %210, %211 : vector<8x128xf32>
    %213 = math.tanh %212 : vector<8x128xf32>
    %214 = arith.mulf %209, %213 : vector<8x128xf32>
    %215 = arith.truncf %214 : vector<8x128xf32> to vector<8x128xbf16>
    %c4 = arith.constant 4 : index
    %c0_52 = arith.constant 0 : index
    %c0_53 = arith.constant 0 : index
    %216 = vector.load %arg8[%c4, %c0_52, %c0_53] : memref<8x8x128xbf16, #tpu.memory_space<vmem>>, vector<1x8x128xbf16>
    %217 = vector.shape_cast %216 : vector<1x8x128xbf16> to vector<8x128xbf16>
    %218 = vector.shape_cast %215 : vector<8x128xbf16> to vector<1x8x128xbf16>
    tpu.vector_store %arg8[%c4, %c0_52, %c0_53], %218 {strides = array<i32>} : memref<8x8x128xbf16, #tpu.memory_space<vmem>>, vector<1x8x128xbf16>,
    %c4_i32 = arith.constant 4 : i32
    %219 = arith.addi %4, %c4_i32 : i32
    %220 = vector.broadcast %219 : i32 to vector<8x1xi32>
    %221 = arith.cmpi sgt, %3, %220 : vector<8x1xi32>
    %222 = vector.shape_cast %221 : vector<8x1xi1> to vector<8x1xi1>
    %223 = vector.broadcast %222 : vector<8x1xi1> to vector<8x128xi1>
    %224 = arith.select %223, %214, %181 : vector<8x128xi1>, vector<8x128xf32>
    %225 = vector.shape_cast %221 : vector<8x1xi1> to vector<8x1xi1>
    %226 = vector.broadcast %225 : vector<8x1xi1> to vector<8x128xi1>
    %227 = arith.select %226, %212, %184 : vector<8x128xi1>, vector<8x128xf32>
    %228 = vector.extract_strided_slice %10 {offsets = [40, 0], sizes = [8, 512], strides = [1, 1]} : vector<64x512xf32> to vector<8x512xf32>
    %229 = arith.truncf %224 : vector<8x128xf32> to vector<8x128xbf16>
    %c0_54 = arith.constant 0 : index
    %c0_55 = arith.constant 0 : index
    %230 = vector.load %arg6[%c0_54, %c0_55] : memref<128x512xbf16, #tpu.memory_space<vmem>>, vector<128x512xbf16>
    %cst_56 = arith.constant dense<0.000000e+00> : vector<8x512xf32>
    %231 = tpu.matmul %229, %230, %cst_56 {dimension_numbers = #tpu.dot_dimension_numbers<[1], [0], [0], [1], [0, 0, 1, 1], [], []>} : vector<8x128xbf16>, vector<128x512xbf16>, vector<8x512xf32> -> vector<8x512xf32>
    %232 = arith.addf %228, %231 : vector<8x512xf32>
    %233 = vector.extract_strided_slice %232 {offsets = [0, 0], sizes = [8, 128], strides = [1, 1]} : vector<8x512xf32> to vector<8x128xf32>
    %234 = arith.negf %233 : vector<8x128xf32>
    %235 = math.exp %234 : vector<8x128xf32>
    %cst_57 = arith.constant 1.000000e+00 : f32
    %236 = vector.broadcast %cst_57 : f32 to vector<8x128xf32>
    %237 = arith.addf %236, %235 : vector<8x128xf32>
    %238 = arith.divf %236, %237 : vector<8x128xf32>
    %239 = vector.extract_strided_slice %232 {offsets = [0, 128], sizes = [8, 128], strides = [1, 1]} : vector<8x512xf32> to vector<8x128xf32>
    %240 = arith.negf %239 : vector<8x128xf32>
    %241 = math.exp %240 : vector<8x128xf32>
    %cst_58 = arith.constant 1.000000e+00 : f32
    %242 = vector.broadcast %cst_58 : f32 to vector<8x128xf32>
    %243 = arith.addf %242, %241 : vector<8x128xf32>
    %244 = arith.divf %242, %243 : vector<8x128xf32>
    %245 = vector.extract_strided_slice %232 {offsets = [0, 256], sizes = [8, 128], strides = [1, 1]} : vector<8x512xf32> to vector<8x128xf32>
    %246 = math.tanh %245 : vector<8x128xf32>
    %247 = vector.extract_strided_slice %232 {offsets = [0, 384], sizes = [8, 128], strides = [1, 1]} : vector<8x512xf32> to vector<8x128xf32>
    %248 = arith.negf %247 : vector<8x128xf32>
    %249 = math.exp %248 : vector<8x128xf32>
    %cst_59 = arith.constant 1.000000e+00 : f32
    %250 = vector.broadcast %cst_59 : f32 to vector<8x128xf32>
    %251 = arith.addf %250, %249 : vector<8x128xf32>
    %252 = arith.divf %250, %251 : vector<8x128xf32>
    %253 = arith.mulf %244, %227 : vector<8x128xf32>
    %254 = arith.mulf %238, %246 : vector<8x128xf32>
    %255 = arith.addf %253, %254 : vector<8x128xf32>
    %256 = math.tanh %255 : vector<8x128xf32>
    %257 = arith.mulf %252, %256 : vector<8x128xf32>
    %258 = arith.truncf %257 : vector<8x128xf32> to vector<8x128xbf16>
    %c5 = arith.constant 5 : index
    %c0_60 = arith.constant 0 : index
    %c0_61 = arith.constant 0 : index
    %259 = vector.load %arg8[%c5, %c0_60, %c0_61] : memref<8x8x128xbf16, #tpu.memory_space<vmem>>, vector<1x8x128xbf16>
    %260 = vector.shape_cast %259 : vector<1x8x128xbf16> to vector<8x128xbf16>
    %261 = vector.shape_cast %258 : vector<8x128xbf16> to vector<1x8x128xbf16>
    tpu.vector_store %arg8[%c5, %c0_60, %c0_61], %261 {strides = array<i32>} : memref<8x8x128xbf16, #tpu.memory_space<vmem>>, vector<1x8x128xbf16>,
    %c5_i32 = arith.constant 5 : i32
    %262 = arith.addi %4, %c5_i32 : i32
    %263 = vector.broadcast %262 : i32 to vector<8x1xi32>
    %264 = arith.cmpi sgt, %3, %263 : vector<8x1xi32>
    %265 = vector.shape_cast %264 : vector<8x1xi1> to vector<8x1xi1>
    %266 = vector.broadcast %265 : vector<8x1xi1> to vector<8x128xi1>
    %267 = arith.select %266, %257, %224 : vector<8x128xi1>, vector<8x128xf32>
    %268 = vector.shape_cast %264 : vector<8x1xi1> to vector<8x1xi1>
    %269 = vector.broadcast %268 : vector<8x1xi1> to vector<8x128xi1>
    %270 = arith.select %269, %255, %227 : vector<8x128xi1>, vector<8x128xf32>
    %271 = vector.extract_strided_slice %10 {offsets = [48, 0], sizes = [8, 512], strides = [1, 1]} : vector<64x512xf32> to vector<8x512xf32>
    %272 = arith.truncf %267 : vector<8x128xf32> to vector<8x128xbf16>
    %c0_62 = arith.constant 0 : index
    %c0_63 = arith.constant 0 : index
    %273 = vector.load %arg6[%c0_62, %c0_63] : memref<128x512xbf16, #tpu.memory_space<vmem>>, vector<128x512xbf16>
    %cst_64 = arith.constant dense<0.000000e+00> : vector<8x512xf32>
    %274 = tpu.matmul %272, %273, %cst_64 {dimension_numbers = #tpu.dot_dimension_numbers<[1], [0], [0], [1], [0, 0, 1, 1], [], []>} : vector<8x128xbf16>, vector<128x512xbf16>, vector<8x512xf32> -> vector<8x512xf32>
    %275 = arith.addf %271, %274 : vector<8x512xf32>
    %276 = vector.extract_strided_slice %275 {offsets = [0, 0], sizes = [8, 128], strides = [1, 1]} : vector<8x512xf32> to vector<8x128xf32>
    %277 = arith.negf %276 : vector<8x128xf32>
    %278 = math.exp %277 : vector<8x128xf32>
    %cst_65 = arith.constant 1.000000e+00 : f32
    %279 = vector.broadcast %cst_65 : f32 to vector<8x128xf32>
    %280 = arith.addf %279, %278 : vector<8x128xf32>
    %281 = arith.divf %279, %280 : vector<8x128xf32>
    %282 = vector.extract_strided_slice %275 {offsets = [0, 128], sizes = [8, 128], strides = [1, 1]} : vector<8x512xf32> to vector<8x128xf32>
    %283 = arith.negf %282 : vector<8x128xf32>
    %284 = math.exp %283 : vector<8x128xf32>
    %cst_66 = arith.constant 1.000000e+00 : f32
    %285 = vector.broadcast %cst_66 : f32 to vector<8x128xf32>
    %286 = arith.addf %285, %284 : vector<8x128xf32>
    %287 = arith.divf %285, %286 : vector<8x128xf32>
    %288 = vector.extract_strided_slice %275 {offsets = [0, 256], sizes = [8, 128], strides = [1, 1]} : vector<8x512xf32> to vector<8x128xf32>
    %289 = math.tanh %288 : vector<8x128xf32>
    %290 = vector.extract_strided_slice %275 {offsets = [0, 384], sizes = [8, 128], strides = [1, 1]} : vector<8x512xf32> to vector<8x128xf32>
    %291 = arith.negf %290 : vector<8x128xf32>
    %292 = math.exp %291 : vector<8x128xf32>
    %cst_67 = arith.constant 1.000000e+00 : f32
    %293 = vector.broadcast %cst_67 : f32 to vector<8x128xf32>
    %294 = arith.addf %293, %292 : vector<8x128xf32>
    %295 = arith.divf %293, %294 : vector<8x128xf32>
    %296 = arith.mulf %287, %270 : vector<8x128xf32>
    %297 = arith.mulf %281, %289 : vector<8x128xf32>
    %298 = arith.addf %296, %297 : vector<8x128xf32>
    %299 = math.tanh %298 : vector<8x128xf32>
    %300 = arith.mulf %295, %299 : vector<8x128xf32>
    %301 = arith.truncf %300 : vector<8x128xf32> to vector<8x128xbf16>
    %c6 = arith.constant 6 : index
    %c0_68 = arith.constant 0 : index
    %c0_69 = arith.constant 0 : index
    %302 = vector.load %arg8[%c6, %c0_68, %c0_69] : memref<8x8x128xbf16, #tpu.memory_space<vmem>>, vector<1x8x128xbf16>
    %303 = vector.shape_cast %302 : vector<1x8x128xbf16> to vector<8x128xbf16>
    %304 = vector.shape_cast %301 : vector<8x128xbf16> to vector<1x8x128xbf16>
    tpu.vector_store %arg8[%c6, %c0_68, %c0_69], %304 {strides = array<i32>} : memref<8x8x128xbf16, #tpu.memory_space<vmem>>, vector<1x8x128xbf16>,
    %c6_i32 = arith.constant 6 : i32
    %305 = arith.addi %4, %c6_i32 : i32
    %306 = vector.broadcast %305 : i32 to vector<8x1xi32>
    %307 = arith.cmpi sgt, %3, %306 : vector<8x1xi32>
    %308 = vector.shape_cast %307 : vector<8x1xi1> to vector<8x1xi1>
    %309 = vector.broadcast %308 : vector<8x1xi1> to vector<8x128xi1>
    %310 = arith.select %309, %300, %267 : vector<8x128xi1>, vector<8x128xf32>
    %311 = vector.shape_cast %307 : vector<8x1xi1> to vector<8x1xi1>
    %312 = vector.broadcast %311 : vector<8x1xi1> to vector<8x128xi1>
    %313 = arith.select %312, %298, %270 : vector<8x128xi1>, vector<8x128xf32>
    %314 = vector.extract_strided_slice %10 {offsets = [56, 0], sizes = [8, 512], strides = [1, 1]} : vector<64x512xf32> to vector<8x512xf32>
    %315 = arith.truncf %310 : vector<8x128xf32> to vector<8x128xbf16>
    %c0_70 = arith.constant 0 : index
    %c0_71 = arith.constant 0 : index
    %316 = vector.load %arg6[%c0_70, %c0_71] : memref<128x512xbf16, #tpu.memory_space<vmem>>, vector<128x512xbf16>
    %cst_72 = arith.constant dense<0.000000e+00> : vector<8x512xf32>
    %317 = tpu.matmul %315, %316, %cst_72 {dimension_numbers = #tpu.dot_dimension_numbers<[1], [0], [0], [1], [0, 0, 1, 1], [], []>} : vector<8x128xbf16>, vector<128x512xbf16>, vector<8x512xf32> -> vector<8x512xf32>
    %318 = arith.addf %314, %317 : vector<8x512xf32>
    %319 = vector.extract_strided_slice %318 {offsets = [0, 0], sizes = [8, 128], strides = [1, 1]} : vector<8x512xf32> to vector<8x128xf32>
    %320 = arith.negf %319 : vector<8x128xf32>
    %321 = math.exp %320 : vector<8x128xf32>
    %cst_73 = arith.constant 1.000000e+00 : f32
    %322 = vector.broadcast %cst_73 : f32 to vector<8x128xf32>
    %323 = arith.addf %322, %321 : vector<8x128xf32>
    %324 = arith.divf %322, %323 : vector<8x128xf32>
    %325 = vector.extract_strided_slice %318 {offsets = [0, 128], sizes = [8, 128], strides = [1, 1]} : vector<8x512xf32> to vector<8x128xf32>
    %326 = arith.negf %325 : vector<8x128xf32>
    %327 = math.exp %326 : vector<8x128xf32>
    %cst_74 = arith.constant 1.000000e+00 : f32
    %328 = vector.broadcast %cst_74 : f32 to vector<8x128xf32>
    %329 = arith.addf %328, %327 : vector<8x128xf32>
    %330 = arith.divf %328, %329 : vector<8x128xf32>
    %331 = vector.extract_strided_slice %318 {offsets = [0, 256], sizes = [8, 128], strides = [1, 1]} : vector<8x512xf32> to vector<8x128xf32>
    %332 = math.tanh %331 : vector<8x128xf32>
    %333 = vector.extract_strided_slice %318 {offsets = [0, 384], sizes = [8, 128], strides = [1, 1]} : vector<8x512xf32> to vector<8x128xf32>
    %334 = arith.negf %333 : vector<8x128xf32>
    %335 = math.exp %334 : vector<8x128xf32>
    %cst_75 = arith.constant 1.000000e+00 : f32
    %336 = vector.broadcast %cst_75 : f32 to vector<8x128xf32>
    %337 = arith.addf %336, %335 : vector<8x128xf32>
    %338 = arith.divf %336, %337 : vector<8x128xf32>
    %339 = arith.mulf %330, %313 : vector<8x128xf32>
    %340 = arith.mulf %324, %332 : vector<8x128xf32>
    %341 = arith.addf %339, %340 : vector<8x128xf32>
    %342 = math.tanh %341 : vector<8x128xf32>
    %343 = arith.mulf %338, %342 : vector<8x128xf32>
    %344 = arith.truncf %343 : vector<8x128xf32> to vector<8x128xbf16>
    %c7 = arith.constant 7 : index
    %c0_76 = arith.constant 0 : index
    %c0_77 = arith.constant 0 : index
    %345 = vector.load %arg8[%c7, %c0_76, %c0_77] : memref<8x8x128xbf16, #tpu.memory_space<vmem>>, vector<1x8x128xbf16>
    %346 = vector.shape_cast %345 : vector<1x8x128xbf16> to vector<8x128xbf16>
    %347 = vector.shape_cast %344 : vector<8x128xbf16> to vector<1x8x128xbf16>
    tpu.vector_store %arg8[%c7, %c0_76, %c0_77], %347 {strides = array<i32>} : memref<8x8x128xbf16, #tpu.memory_space<vmem>>, vector<1x8x128xbf16>,
    %c7_i32 = arith.constant 7 : i32
    %348 = arith.addi %4, %c7_i32 : i32
    %349 = vector.broadcast %348 : i32 to vector<8x1xi32>
    %350 = arith.cmpi sgt, %3, %349 : vector<8x1xi32>
    %351 = vector.shape_cast %350 : vector<8x1xi1> to vector<8x1xi1>
    %352 = vector.broadcast %351 : vector<8x1xi1> to vector<8x128xi1>
    %353 = arith.select %352, %343, %310 : vector<8x128xi1>, vector<8x128xf32>
    %354 = vector.shape_cast %350 : vector<8x1xi1> to vector<8x1xi1>
    %355 = vector.broadcast %354 : vector<8x1xi1> to vector<8x128xi1>
    %356 = arith.select %355, %341, %313 : vector<8x128xi1>, vector<8x128xf32>
    %c0_78 = arith.constant 0 : index
    %c0_79 = arith.constant 0 : index
    %357 = vector.load %arg9[%c0_78, %c0_79] : memref<8x128xf32, #tpu.memory_space<vmem>>, vector<8x128xf32>
    tpu.vector_store %arg9[%c0_78, %c0_79], %353 {strides = array<i32>} : memref<8x128xf32, #tpu.memory_space<vmem>>, vector<8x128xf32>,
    %c0_80 = arith.constant 0 : index
    %c0_81 = arith.constant 0 : index
    %358 = vector.load %arg10[%c0_80, %c0_81] : memref<8x128xf32, #tpu.memory_space<vmem>>, vector<8x128xf32>
    tpu.vector_store %arg10[%c0_80, %c0_81], %356 {strides = array<i32>} : memref<8x128xf32, #tpu.memory_space<vmem>>, vector<8x128xf32>,
    return
  }
  func.func @transform_0(%arg0: i32) -> (i32, i32) {
    %c0_i32 = arith.constant 0 : i32
    %c0_i32_0 = arith.constant 0 : i32
    %c0_i32_1 = arith.constant 0 : i32
    return %c0_i32, %c0_i32_0 : i32, i32
  }
  func.func @transform_1(%arg0: i32) -> (i32, i32) {
    %c0_i32 = arith.constant 0 : i32
    %c0_i32_0 = arith.constant 0 : i32
    return %arg0, %c0_i32 : i32, i32
  }
  func.func @transform_2(%arg0: i32) -> (i32, i32) {
    %c0_i32 = arith.constant 0 : i32
    %c0_i32_0 = arith.constant 0 : i32
    %c0_i32_1 = arith.constant 0 : i32
    return %c0_i32, %c0_i32_0 : i32, i32
  }
  func.func @transform_3(%arg0: i32) -> (i32, i32) {
    %c0_i32 = arith.constant 0 : i32
    %c0_i32_0 = arith.constant 0 : i32
    %c0_i32_1 = arith.constant 0 : i32
    return %c0_i32, %c0_i32_0 : i32, i32
  }
  func.func @transform_4(%arg0: i32) -> (i32, i32) {
    %c0_i32 = arith.constant 0 : i32
    %c0_i32_0 = arith.constant 0 : i32
    %c0_i32_1 = arith.constant 0 : i32
    return %c0_i32, %c0_i32_0 : i32, i32
  }
  func.func @transform_5(%arg0: i32) -> (i32, i32) {
    %c0_i32 = arith.constant 0 : i32
    %c0_i32_0 = arith.constant 0 : i32
    %c0_i32_1 = arith.constant 0 : i32
    return %c0_i32, %c0_i32_0 : i32, i32
  }
  func.func @transform_6(%arg0: i32) -> (i32, i32) {
    %c0_i32 = arith.constant 0 : i32
    %c0_i32_0 = arith.constant 0 : i32
    %c0_i32_1 = arith.constant 0 : i32
    return %c0_i32, %c0_i32_0 : i32, i32
  }
  func.func @transform_7(%arg0: i32) -> (i32, i32, i32) {
    %c0_i32 = arith.constant 0 : i32
    %c0_i32_0 = arith.constant 0 : i32
    %c0_i32_1 = arith.constant 0 : i32
    return %arg0, %c0_i32, %c0_i32_0 : i32, i32, i32
  }
}

</mosaic_0001>

<bundles_post_ra>
// kernel: tpu_custom_call.1
= control target key start
LH: loop header
LB: loop body
LE: loop exit
PB: predicated region body
PF: predicated region fallthrough
CT: control target
= control target key end

     0   :  { %12 = vsyncpa [#allocation5], 0  ;;  %s4441_s0 = inlined_call_operand.vmem [shape: s32[8,1], index: 0, kind: input, shape index: {}]   ;;  %s4442_s1 = inlined_call_operand.hbm [shape: bf16[64,128], index: 1, kind: input, shape index: {}]   ;;  %s4443_s2 = inlined_call_operand.vmem [shape: f32[8,128], index: 2, kind: input, shape index: {}]   ;;  %s4444_s3 = inlined_call_operand.hbm [shape: f32[8,128], index: 3, kind: input, shape index: {}]   ;;  %s4445_s4 = inlined_call_operand.hbm [shape: bf16[128,512], index: 4, kind: input, shape index: {}]   ;;  %s4446_s5 = inlined_call_operand.hbm [shape: bf16[128,512], index: 5, kind: input, shape index: {}]   ;;  %s4447_s6 = inlined_call_operand.vmem [shape: f32[1,512], index: 6, kind: input, shape index: {}]   ;;  %s4448_s7 = inlined_call_operand.hbm [shape: bf16[8,8,128], index: 7, kind: output, shape index: {}]  }
   0x1   :  { %13 = vsyncpa [#allocation8], 0 }
   0x2   :  { %14 = vsyncpa [#allocation11], 0 }
   0x3   :  { %15 = vsyncpa [#allocation6], 0  ;;  %s3792_s24 = smov [#allocation7]   ;;  %s3793_s26 = smov [#allocation4]  }
   0x4   :  { %s38_s25 = sshll.u32 %s3792_s24, 4  ;;  %s23_s27 = sshll.u32 %s3793_s26, 4  ;;  %s39_s25 = int_to_ptr.vmem [resolvable:$true] %s38_s25  ;;  %s24_s27 = int_to_ptr.vmem [resolvable:$true] %s23_s27 }
   0x5   :  { %s3692_s28 = scalar_lea.vmem %s39_s25, 128  ;;  %p3697_p1 = scmp.lt.s32.totalorder %s39_s25, %s39_s25 }
   0x6   :  { %p3693_p0 = scmp.ne.s32.totalorder %s39_s25, %s3692_s28  ;;  %p3698_p2 = scmp.lt.s32.totalorder %s3692_s28, %s3692_s28 }
   0x8   :  { %p3699_p3 = por %p3698_p2, %p3697_p1 }
   0xa   :  { %p3700_p4 = pnand %p3699_p3, %p3693_p0 }
   0xc   :  { %3703 = shalt.err (!%p3700_p4)
}
   0xd   :  { %41 = dma.hbm_to_vmem [thread:$0]  %s4444_s3, 128, %s39_s25, [#allocation8]  }
   0xe   :  { %s3712_s8 = scalar_lea.vmem %s24_s27, 512  ;;  %p3717_p6 = scmp.lt.s32.totalorder %s24_s27, %s24_s27 }
   0xf   :  { %p3713_p5 = scmp.ne.s32.totalorder %s24_s27, %s3712_s8  ;;  %p3718_p7 = scmp.lt.s32.totalorder %s3712_s8, %s3712_s8 }
  0x11   :  { %p3719_p8 = por %p3718_p7, %p3717_p6 }
  0x13   :  { %p3720_p9 = pnand %p3719_p8, %p3713_p5 }
  0x15   :  { %3723 = shalt.err (!%p3720_p9)
}
  0x16   :  { %s3794_s9 = smov 64   ;;  %s3795_s10 = smov 4  }
  0x17   :  { %29 = dma.hbm_to_vmem [thread:$0]  %s4442_s1, 512, %s24_s27, [#allocation5], %s3794_s9, %s3794_s9, %s3795_s10  }
  0x18   :  { %s3796_s13 = smov [#allocation9]  }
  0x19   :  { %s47_s14 = sshll.u32 %s3796_s13, 4  ;;  %s48_s14 = int_to_ptr.vmem [resolvable:$true] %s47_s14 }
  0x1a   :  { %s3732_s3 = scalar_lea.vmem %s48_s14, 4096  ;;  %p3737_p11 = scmp.lt.s32.totalorder %s48_s14, %s48_s14 }
  0x1b   :  { %p3733_p10 = scmp.ne.s32.totalorder %s48_s14, %s3732_s3  ;;  %p3738_p12 = scmp.lt.s32.totalorder %s3732_s3, %s3732_s3 }
  0x1d   :  { %p3739_p13 = por %p3738_p12, %p3737_p11 }
  0x1f   :  { %p3740_p0 = pnand %p3739_p13, %p3733_p10 }
  0x21   :  { %3743 = shalt.err (!%p3740_p0)
}
  0x22   :  { %s3797_s15 = smov 256   ;;  %s3798_s16 = smov 16  }
  0x23   :  { %53 = dma.hbm_to_vmem [thread:$0]  %s4445_s4, 4096, %s48_s14, [#allocation8], %s3797_s15, %s3797_s15, %s3798_s16  }
  0x24   :  { %s3799_s19 = smov [#allocation10]  }
  0x25   :  { %s59_s20 = sshll.u32 %s3799_s19, 4  ;;  %s60_s20 = int_to_ptr.vmem [resolvable:$true] %s59_s20 }
  0x26   :  { %s3752_s1 = scalar_lea.vmem %s60_s20, 4096  ;;  %p3757_p2 = scmp.lt.s32.totalorder %s60_s20, %s60_s20 }
  0x27   :  { %p3753_p1 = scmp.ne.s32.totalorder %s60_s20, %s3752_s1  ;;  %p3758_p3 = scmp.lt.s32.totalorder %s3752_s1, %s3752_s1 }
  0x29   :  { %p3759_p4 = por %p3758_p3, %p3757_p2 }
  0x2b   :  { %p3760_p5 = pnand %p3759_p4, %p3753_p1 }
  0x2d   :  { %3763 = shalt.err (!%p3760_p5)
}
  0x2e   :  { %65 = dma.hbm_to_vmem [thread:$0]  %s4446_s5, 4096, %s60_s20, [#allocation11], %s3797_s15, %s3797_s15, %s3798_s16  }
  0x2f   :  { %3784 = dma.done.wait [#allocation5], 512  }
  0x30   :  { %3785 = vsyncadd [#allocation5], 4294966784 }
  0x31   :  { %3786 = dma.done.wait [#allocation8], 4224  }
  0x32   :  { %3787 = vsyncadd [#allocation8], 4294963072 }
  0x33   :  { %3788 = dma.done.wait [#allocation11], 4096  }
  0x34   :  { %3789 = vsyncadd [#allocation11], 4294963200  ;;  %v4449_v0 = vmov 0   ;;  %v3360_v1 = vld [vmem:[#allocation9 + $0xe4] ss:$16 sps:$4 sm:$0xff]   ;;  %v3408_v35 = vld [vmem:[#allocation4] sm:$0xff]  }
  0x35   :  { %369 = vmatprep.mubr.bf16.mxu0 %v4449_v0  ;;  %442 = vmatprep.mubr.bf16.mxu1 %v4449_v0  ;;  %v3362_v2 = vld [vmem:[#allocation9 + $0xec] ss:$16 sps:$4 sm:$0xff]   ;;  %v3364_v3 = vld [vmem:[#allocation9 + $0xe0] ss:$16 sps:$4 sm:$0xff]   ;;  %v3365_v4 = vld [vmem:[#allocation9 + $0xe8] ss:$16 sps:$4 sm:$0xff]  }
  0x36   :  { %3358 = vset.pattern.permute.xlu0 %v4449_v0  ;;  %3359 = vset.pattern.permute.xlu1 %v4449_v0  ;;  %v3366_v5 = vld [vmem:[#allocation9 + $0xc4] ss:$16 sps:$4 sm:$0xff]   ;;  %v3368_v6 = vld [vmem:[#allocation9 + $0xcc] ss:$16 sps:$4 sm:$0xff]   ;;  %v3370_v7 = vld [vmem:[#allocation9 + $0xc0] ss:$16 sps:$4 sm:$0xff]  }
  0x37   :  { %337 = vmatprep.subr.bf16.mxu0 %v3360_v1  ;;  %410 = vmatprep.subr.bf16.mxu1 %v3362_v2  ;;  %v3371_v8 = vld [vmem:[#allocation9 + $0xc8] ss:$16 sps:$4 sm:$0xff]   ;;  %v3372_v9 = vld [vmem:[#allocation9 + $0xa4] ss:$16 sps:$4 sm:$0xff]   ;;  %v3374_v10 = vld [vmem:[#allocation9 + $0xac] ss:$16 sps:$4 sm:$0xff]  }
  0x38   :  { %338 = vmatpush1.bf16.msra.mxu0 %v3364_v3  ;;  %411 = vmatpush1.bf16.msra.mxu1 %v3365_v4  ;;  %v3376_v11 = vld [vmem:[#allocation9 + $0xa0] ss:$16 sps:$4 sm:$0xff]   ;;  %v3377_v12 = vld [vmem:[#allocation9 + $0xa8] ss:$16 sps:$4 sm:$0xff]   ;;  %v3378_v13 = vld [vmem:[#allocation9 + $0x84] ss:$16 sps:$4 sm:$0xff]  }
  0x39   :  { %339 = vmatprep.subr.bf16.mxu0 %v3366_v5  ;;  %412 = vmatprep.subr.bf16.mxu1 %v3368_v6  ;;  %v3380_v14 = vld [vmem:[#allocation9 + $0x8c] ss:$16 sps:$4 sm:$0xff]   ;;  %v3382_v15 = vld [vmem:[#allocation9 + $0x80] ss:$16 sps:$4 sm:$0xff]   ;;  %v3383_v16 = vld [vmem:[#allocation9 + $0x88] ss:$16 sps:$4 sm:$0xff]  }
  0x3a   :  { %v3384_v17 = vld [vmem:[#allocation9 + $0x64] ss:$16 sps:$4 sm:$0xff]   ;;  %v3386_v18 = vld [vmem:[#allocation9 + $0x6c] ss:$16 sps:$4 sm:$0xff]   ;;  %v3388_v19 = vld [vmem:[#allocation9 + $0x60] ss:$16 sps:$4 sm:$0xff]  }
  0x3b   :  { %v3389_v20 = vld [vmem:[#allocation9 + $0x68] ss:$16 sps:$4 sm:$0xff]   ;;  %v3390_v21 = vld [vmem:[#allocation9 + $0x44] ss:$16 sps:$4 sm:$0xff]   ;;  %v3392_v22 = vld [vmem:[#allocation9 + $0x4c] ss:$16 sps:$4 sm:$0xff]  }
  0x3c   :  { %340 = vmatpush1.bf16.msra.mxu0 %v3370_v7  ;;  %413 = vmatpush1.bf16.msra.mxu1 %v3371_v8  ;;  %v3394_v23 = vld [vmem:[#allocation9 + $0x40] ss:$16 sps:$4 sm:$0xff]   ;;  %v3395_v24 = vld [vmem:[#allocation9 + $0x48] ss:$16 sps:$4 sm:$0xff]   ;;  %v3396_v25 = vld [vmem:[#allocation9 + $0x24] ss:$16 sps:$4 sm:$0xff]  }
  0x3d   :  { %341 = vmatprep.subr.bf16.mxu0 %v3372_v9  ;;  %414 = vmatprep.subr.bf16.mxu1 %v3374_v10  ;;  %v3398_v26 = vld [vmem:[#allocation9 + $0x2c] ss:$16 sps:$4 sm:$0xff]   ;;  %v3400_v27 = vld [vmem:[#allocation9 + $0x20] ss:$16 sps:$4 sm:$0xff]   ;;  %v3401_v28 = vld [vmem:[#allocation9 + $0x28] ss:$16 sps:$4 sm:$0xff]  }
  0x3e   :  { %v3402_v29 = vld [vmem:[#allocation9 + $0x4] ss:$16 sps:$4 sm:$0xff]   ;;  %v3404_v30 = vld [vmem:[#allocation9 + $0xc] ss:$16 sps:$4 sm:$0xff]   ;;  %v3406_v31 = vld [vmem:[#allocation9] ss:$16 sps:$4 sm:$0xff]  }
  0x3f   :  { %v3407_v32 = vld [vmem:[#allocation9 + $0x8] ss:$16 sps:$4 sm:$0xff]   ;;  %v3861_v33 = vld [vmem:[#allocation10 + $0xe4] ss:$16 sps:$4 sm:$0xff]   ;;  %v3863_v34 = vld [vmem:[#allocation10 + $0xec] ss:$16 sps:$4 sm:$0xff]  }
  0x40   :  { %342 = vmatpush1.bf16.msra.mxu0 %v3376_v11  ;;  %415 = vmatpush1.bf16.msra.mxu1 %v3377_v12  ;;  %v3865_v36 = vld [vmem:[#allocation10 + $0xe0] ss:$16 sps:$4 sm:$0xff]   ;;  %v3867_v37 = vld [vmem:[#allocation10 + $0xe8] ss:$16 sps:$4 sm:$0xff]   ;;  %v3871_v38 = vld [vmem:[#allocation10 + $0xc4] ss:$16 sps:$4 sm:$0xff]  }
  0x41   :  { %343 = vmatprep.subr.bf16.mxu0 %v3378_v13  ;;  %416 = vmatprep.subr.bf16.mxu1 %v3380_v14  ;;  %v3873_v39 = vld [vmem:[#allocation10 + $0xcc] ss:$16 sps:$4 sm:$0xff]   ;;  %v3875_v40 = vld [vmem:[#allocation10 + $0xc0] ss:$16 sps:$4 sm:$0xff]   ;;  %v3879_v41 = vld [vmem:[#allocation10 + $0xc8] ss:$16 sps:$4 sm:$0xff]   ;;  %v133_v13 = vlaneseq }
  0x42   :  { %v3883_v42 = vld [vmem:[#allocation10 + $0xa4] ss:$16 sps:$4 sm:$0xff]   ;;  %v3885_v43 = vld [vmem:[#allocation10 + $0xac] ss:$16 sps:$4 sm:$0xff]   ;;  %v3889_v45 = vld [vmem:[#allocation10 + $0xa0] ss:$16 sps:$4 sm:$0xff]  }
  0x43   :  { %v3421_v44 = vld [vmem:[#allocation4 + $0x8] sm:$0xff]   ;;  %v3891_v46 = vld [vmem:[#allocation10 + $0xa8] ss:$16 sps:$4 sm:$0xff]   ;;  %v3899_v48 = vld [vmem:[#allocation10 + $0x8c] ss:$16 sps:$4 sm:$0xff]   ;;  %v134_v14 = vshrl.u32 %v133_v13, 7 }
  0x44   :  { %344 = vmatpush1.bf16.msra.mxu0 %v3382_v15  ;;  %417 = vmatpush1.bf16.msra.mxu1 %v3383_v16  ;;  %v3895_v47 = vld [vmem:[#allocation10 + $0x84] ss:$16 sps:$4 sm:$0xff]   ;;  %v3901_v49 = vld [vmem:[#allocation10 + $0x80] ss:$16 sps:$4 sm:$0xff]   ;;  %v3903_v50 = vld [vmem:[#allocation10 + $0x88] ss:$16 sps:$4 sm:$0xff]  }
  0x45   :  { %345 = vmatprep.subr.bf16.mxu0 %v3384_v17  ;;  %418 = vmatprep.subr.bf16.mxu1 %v3386_v18  ;;  %v3907_v51 = vld [vmem:[#allocation10 + $0x64] ss:$16 sps:$4 sm:$0xff]   ;;  %v3911_v52 = vld [vmem:[#allocation10 + $0x6c] ss:$16 sps:$4 sm:$0xff]   ;;  %v3915_v54 = vld [vmem:[#allocation10 + $0x60] ss:$16 sps:$4 sm:$0xff]  }
  0x46   :  { %v3434_v53 = vld [vmem:[#allocation4 + $0x10] sm:$0xff]   ;;  %v3922_v56 = vld [vmem:[%s4441_s0] sm:$0xff]  ;;  %v3926_v57 = vld [vmem:[#allocation10 + $0x44] ss:$16 sps:$4 sm:$0xff]   ;;  %v143_v15 = vsub.s32 2, %v134_v14  ;;  %v135_v16 = vsub.s32 0, %v134_v14 }
  0x47   :  { %v3917_v55 = vld [vmem:[#allocation10 + $0x68] ss:$16 sps:$4 sm:$0xff]   ;;  %vm791_vm0 = vcmp.gt.s32.totalorder %v3922_v56, 0  ;;  %v3931_v58 = vld [vmem:[#allocation10 + $0x4c] ss:$16 sps:$4 sm:$0xff]   ;;  %vm1107_vm1 = vcmp.gt.s32.totalorder %v3922_v56, 1 }
  0x48   :  { %346 = vmatpush1.bf16.msra.mxu0 %v3388_v19  ;;  %419 = vmatpush1.bf16.msra.mxu1 %v3389_v20  ;;  %v792_v59 = vsel %vm791_vm0, 1, %v4449_v0  ;;  %v3935_v60 = vld [vmem:[#allocation10 + $0x40] ss:$16 sps:$4 sm:$0xff]   ;;  %v3937_v61 = vld [vmem:[#allocation10 + $0x48] ss:$16 sps:$4 sm:$0xff]   ;;  %v1108_v1 = vsel %vm1107_vm1, 1, %v4449_v0 }
  0x49   :  { %347 = vmatprep.subr.bf16.mxu0 %v3390_v21  ;;  %420 = vmatprep.subr.bf16.mxu1 %v3392_v22  ;;  %v3939_v62 = vld [vmem:[#allocation10 + $0x24] ss:$16 sps:$4 sm:$0xff]   ;;  %v3941_v63 = vld [vmem:[#allocation10 + $0x2c] ss:$16 sps:$4 sm:$0xff]   ;;  %v3950_v3 = vld [vmem:[#allocation10 + $0x20] ss:$16 sps:$4 sm:$0xff]  }
  0x4a   :  { %794 = vperm.xlu0 %3358, %v792_v59   ;;  %v3447_v2 = vld [vmem:[#allocation4 + $0x18] sm:$0xff]   ;;  %v3952_v4 = vld [vmem:[#allocation10 + $0x28] ss:$16 sps:$4 sm:$0xff]   ;;  %v3956_v6 = vld [vmem:[#allocation10 + $0xc] ss:$16 sps:$4 sm:$0xff]   ;;  %vm2055_vm2 = vcmp.gt.s32.totalorder %v3922_v56, 4 }
  0x4b   :  { %v3954_v5 = vld [vmem:[#allocation10 + $0x4] ss:$16 sps:$4 sm:$0xff]   ;;  %v3963_v7 = vld [vmem:[#allocation10] ss:$16 sps:$4 sm:$0xff]   ;;  %v3965_v8 = vld [vmem:[#allocation10 + $0x8] ss:$16 sps:$4 sm:$0xff]  }
  0x4c   :  { %348 = vmatpush1.bf16.msra.mxu0 %v3394_v23  ;;  %421 = vmatpush1.bf16.msra.mxu1 %v3395_v24  ;;  %v3970_v9 = vld [vmem:[%s4443_s2] sm:$0xff]  ;;  %v2056_v10 = vsel %vm2055_vm2, 1, %v4449_v0  ;;  %vm2687_vm3 = vcmp.gt.s32.totalorder %v3922_v56, 6  ;;  %v147_v17 = vsub.s32 3, %v134_v14  ;;  %v139_v22 = vsub.s32 1, %v134_v14 }
  0x4d   :  { %349 = vmatprep.subr.bf16.mxu0 %v3396_v25  ;;  %422 = vmatprep.subr.bf16.mxu1 %v3398_v26  ;;  %v485_v11 = vpack.c.bf16 %v3970_v9, %v3970_v9  ;;  %v2688_v12 = vsel %vm2687_vm3, 1, %v4449_v0  ;;  %v131_v18 = vld [vmem:[%s4447_s6] sm:$0xf]  ;;  %vm1423_vm5 = vcmp.gt.s32.totalorder %v3922_v56, 2  ;;  %vm1739_vm6 = vcmp.gt.s32.totalorder %v3922_v56, 3  ;;  %s3801_s6 = smov [#allocation12]  }
  0x4e   :  { %1110 = vperm.xlu0 %3358, %v1108_v1   ;;  %v4028_v21 = vrot.slane %v131_v18, %v143_v15  ;;  %v136_v25 = vrot.slane %v131_v18, %v135_v16  ;;  %v4034_v26 = vrot.slane %v131_v18, %v147_v17  ;;  %vm2371_vm7 = vcmp.gt.s32.totalorder %v3922_v56, 5  ;;  %s3018_s25 = sshll.u32 %s3801_s6, 4  ;;  %s3019_s25 = int_to_ptr.vmem [resolvable:$true] %s3018_s25 }
  0x4f   :  { %s3764_s26 = scalar_lea.vmem %s3019_s25, 512  ;;  %p3769_p7 = scmp.lt.s32.totalorder %s3019_s25, %s3019_s25 }
  0x50   :  { %350 = vmatpush1.bf16.msra.mxu0 %v3400_v27  ;;  %423 = vmatpush1.bf16.msra.mxu1 %v3401_v28  ;;  %p3765_p6 = scmp.ne.s32.totalorder %s3019_s25, %s3764_s26  ;;  %p3770_p8 = scmp.lt.s32.totalorder %s3764_s26, %s3764_s26 }
  0x51   :  { %351 = vmatprep.subr.bf16.mxu0 %v3402_v29  ;;  %424 = vmatprep.subr.bf16.mxu1 %v3404_v30  ;;  %v140_v29 = vrot.slane %v131_v18, %v139_v22 }
  0x52   :  { %2058 = vperm.xlu0 %3358, %v2056_v10   ;;  %p3771_p9 = por %p3770_p8, %p3769_p7 }
  0x54   :  { %352 = vmatpush1.bf16.msra.mxu0 %v3406_v31  ;;  %425 = vmatpush1.bf16.msra.mxu1 %v3407_v32  ;;  %p3772_p10 = pnand %p3771_p9, %p3765_p6 }
  0x55   :  { %678 = vmatprep.subr.bf16.mxu0 %v3861_v33  ;;  %719 = vmatprep.subr.bf16.mxu1 %v3863_v34 }
  0x56   :  { %2690 = vperm.xlu0 %3358, %v2688_v12  }
  0x57   :  { %370 = vmatmul.mubr.bf16.vlgmr.msra.gmra.mxu0 %v3408_v35  ;;  %443 = vmatmul.mubr.bf16.vlgmr.msra.gmra.mxu1 %v3408_v35 }
  0x58   :  { %679 = vmatpush1.bf16.msra.mxu0 %v3865_v36  ;;  %720 = vmatpush1.bf16.msra.mxu1 %v3867_v37 }
  0x59   :  { %680 = vmatprep.subr.bf16.mxu0 %v3871_v38  ;;  %721 = vmatprep.subr.bf16.mxu1 %v3873_v39 }
  0x5a   :  { %379 = vmatprep.mubr.bf16.mxu0 %v4449_v0  ;;  %452 = vmatprep.mubr.bf16.mxu1 %v4449_v0 }
  0x5c   :  { %681 = vmatpush1.bf16.msra.mxu0 %v3875_v40  ;;  %722 = vmatpush1.bf16.msra.mxu1 %v3879_v41 }
  0x5d   :  { %682 = vmatprep.subr.bf16.mxu0 %v3883_v42  ;;  %723 = vmatprep.subr.bf16.mxu1 %v3885_v43 }
  0x5f   :  { %380 = vmatmul.mubr.bf16.gmra.mxu0 %v3421_v44  ;;  %453 = vmatmul.mubr.bf16.gmra.mxu1 %v3421_v44 }
  0x60   :  { %683 = vmatpush1.bf16.msra.mxu0 %v3889_v45  ;;  %724 = vmatpush1.bf16.msra.mxu1 %v3891_v46 }
  0x61   :  { %684 = vmatprep.subr.bf16.mxu0 %v3895_v47  ;;  %725 = vmatprep.subr.bf16.mxu1 %v3899_v48 }
  0x62   :  { %389 = vmatprep.mubr.bf16.mxu0 %v4449_v0  ;;  %462 = vmatprep.mubr.bf16.mxu1 %v4449_v0 }
  0x64   :  { %685 = vmatpush1.bf16.msra.mxu0 %v3901_v49  ;;  %726 = vmatpush1.bf16.msra.mxu1 %v3903_v50 }
  0x65   :  { %686 = vmatprep.subr.bf16.mxu0 %v3907_v51  ;;  %727 = vmatprep.subr.bf16.mxu1 %v3911_v52 }
  0x67   :  { %390 = vmatmul.mubr.bf16.gmra.mxu0 %v3434_v53  ;;  %463 = vmatmul.mubr.bf16.gmra.mxu1 %v3434_v53 }
  0x68   :  { %687 = vmatpush1.bf16.msra.mxu0 %v3915_v54  ;;  %728 = vmatpush1.bf16.msra.mxu1 %v3917_v55 }
  0x69   :  { %688 = vmatprep.subr.bf16.mxu0 %v3926_v57  ;;  %729 = vmatprep.subr.bf16.mxu1 %v3931_v58 }
  0x6a   :  { %399 = vmatprep.mubr.bf16.mxu0 %v4449_v0  ;;  %472 = vmatprep.mubr.bf16.mxu1 %v4449_v0 }
  0x6c   :  { %689 = vmatpush1.bf16.msra.mxu0 %v3935_v60  ;;  %730 = vmatpush1.bf16.msra.mxu1 %v3937_v61 }
  0x6d   :  { %690 = vmatprep.subr.bf16.mxu0 %v3939_v62  ;;  %731 = vmatprep.subr.bf16.mxu1 %v3941_v63 }
  0x6f   :  { %400 = vmatmul.mubr.bf16.gmra.mxu0 %v3447_v2  ;;  %473 = vmatmul.mubr.bf16.gmra.mxu1 %v3447_v2 }
  0x70   :  { %691 = vmatpush1.bf16.msra.mxu0 %v3950_v3  ;;  %732 = vmatpush1.bf16.msra.mxu1 %v3952_v4 }
  0x71   :  { %692 = vmatprep.subr.bf16.mxu0 %v3954_v5  ;;  %733 = vmatprep.subr.bf16.mxu1 %v3956_v6 }
  0x72   :  { %710 = vmatprep.mubr.bf16.mxu0 %v4449_v0  ;;  %751 = vmatprep.mubr.bf16.mxu1 %v4449_v0 }
  0x74   :  { %693 = vmatpush1.bf16.msra.mxu0 %v3963_v7  ;;  %734 = vmatpush1.bf16.msra.mxu1 %v3965_v8 }
  0x75   :  { %992 = vmatprep.subr.bf16.mxu0 %v3861_v33  ;;  %1033 = vmatprep.subr.bf16.mxu1 %v3863_v34 }
  0x77   :  { %711 = vmatmul.mubr.bf16.vlgmr.msra.gmra.mxu0 %v485_v11  ;;  %752 = vmatmul.mubr.bf16.vlgmr.msra.gmra.mxu1 %v485_v11 }
  0x78   :  { %993 = vmatpush1.bf16.msra.mxu0 %v3865_v36  ;;  %1034 = vmatpush1.bf16.msra.mxu1 %v3867_v37 }
  0x79   :  { %994 = vmatprep.subr.bf16.mxu0 %v3871_v38  ;;  %1035 = vmatprep.subr.bf16.mxu1 %v3873_v39 }
  0x7a   :  { %1024 = vmatprep.mubr.bf16.mxu0 %v4449_v0  ;;  %1065 = vmatprep.mubr.bf16.mxu1 %v4449_v0 }
  0x7c   :  { %995 = vmatpush1.bf16.msra.mxu0 %v3875_v40  ;;  %1036 = vmatpush1.bf16.msra.mxu1 %v3879_v41 }
  0x7d   :  { %996 = vmatprep.subr.bf16.mxu0 %v3883_v42  ;;  %1037 = vmatprep.subr.bf16.mxu1 %v3885_v43 }
  0x80   :  { %997 = vmatpush1.bf16.msra.mxu0 %v3889_v45  ;;  %1038 = vmatpush1.bf16.msra.mxu1 %v3891_v46 }
  0x81   :  { %998 = vmatprep.subr.bf16.mxu0 %v3895_v47  ;;  %1039 = vmatprep.subr.bf16.mxu1 %v3899_v48 }
  0x84   :  { %999 = vmatpush1.bf16.msra.mxu0 %v3901_v49  ;;  %1040 = vmatpush1.bf16.msra.mxu1 %v3903_v50 }
  0x85   :  { %1000 = vmatprep.subr.bf16.mxu0 %v3907_v51  ;;  %1041 = vmatprep.subr.bf16.mxu1 %v3911_v52 }
  0x88   :  { %1001 = vmatpush1.bf16.msra.mxu0 %v3915_v54  ;;  %1042 = vmatpush1.bf16.msra.mxu1 %v3917_v55 }
  0x89   :  { %1002 = vmatprep.subr.bf16.mxu0 %v3926_v57  ;;  %1043 = vmatprep.subr.bf16.mxu1 %v3931_v58 }
  0x8c   :  { %1003 = vmatpush1.bf16.msra.mxu0 %v3935_v60  ;;  %1044 = vmatpush1.bf16.msra.mxu1 %v3937_v61 }
  0x8d   :  { %1004 = vmatprep.subr.bf16.mxu0 %v3939_v62  ;;  %1045 = vmatprep.subr.bf16.mxu1 %v3941_v63 }
  0x90   :  { %1005 = vmatpush1.bf16.msra.mxu0 %v3950_v3  ;;  %1046 = vmatpush1.bf16.msra.mxu1 %v3952_v4 }
  0x91   :  { %1006 = vmatprep.subr.bf16.mxu0 %v3954_v5  ;;  %1047 = vmatprep.subr.bf16.mxu1 %v3956_v6 }
  0x94   :  { %1007 = vmatpush1.bf16.msra.mxu0 %v3963_v7  ;;  %1048 = vmatpush1.bf16.msra.mxu1 %v3965_v8 }
  0x95   :  { %1308 = vmatprep.subr.bf16.mxu0 %v3861_v33  ;;  %1349 = vmatprep.subr.bf16.mxu1 %v3863_v34 }
 0x117   :  { %v4024_v19 = vpop.f32.mrf.mxu0  ;;  %v4026_v20 = vpop.f32.mrf.mxu1 }
 0x119   :  { %v4030_v23 = vpop.f32.mrf.mxu0  ;;  %v4032_v24 = vpop.f32.mrf.mxu1 }
 0x11b   :  { %v375_v27 = vpop.f32.mrf.mxu0  ;;  %v448_v28 = vpop.f32.mrf.mxu1 }
 0x11c   :  { %v4036_v30 = vadd.f32 %v375_v27, %v136_v25  ;;  %v4039_v31 = vadd.f32 %v448_v28, %v4028_v21 }
 0x11d   :  { %v377_v32 = vpop.f32.mrf.mxu0  ;;  %v450_v33 = vpop.f32.mrf.mxu1 }
 0x11e   :  { %v4041_v34 = vadd.f32 %v377_v32, %v140_v29  ;;  %v4044_v35 = vadd.f32 %v450_v33, %v4034_v26 }
 0x11f   :  { %v381_v44 = vpop.f32.mrf.mxu0  ;;  %v454_v53 = vpop.f32.mrf.mxu1 }
 0x120   :  { %v4046_v59 = vadd.f32 %v381_v44, %v136_v25  ;;  %v4049_v1 = vadd.f32 %v454_v53, %v4028_v21 }
 0x121   :  { %v383_v2 = vpop.f32.mrf.mxu0  ;;  %v456_v10 = vpop.f32.mrf.mxu1 }
 0x122   :  { %4451 = vst [vmem:[#allocation17_spill] sm:$0xff] %v4049_v1  ;;  %v4051_v11 = vadd.f32 %v383_v2, %v140_v29  ;;  %v4054_v12 = vadd.f32 %v456_v10, %v4034_v26 }
 0x123   :  { %v385_v13 = vpop.f32.mrf.mxu0  ;;  %v458_v14 = vpop.f32.mrf.mxu1 }
 0x124   :  { %v4056_v15 = vadd.f32 %v385_v13, %v136_v25  ;;  %v4059_v16 = vadd.f32 %v458_v14, %v4028_v21 }
 0x125   :  { %v387_v17 = vpop.f32.mrf.mxu0  ;;  %v460_v18 = vpop.f32.mrf.mxu1 }
 0x126   :  { %4452 = vst [vmem:[#allocation18_spill] sm:$0xff] %v4056_v15  ;;  %4453 = vst [vmem:[#allocation19_spill] sm:$0xff] %v4059_v16  ;;  %v4061_v22 = vadd.f32 %v387_v17, %v140_v29  ;;  %v4064_v27 = vadd.f32 %v460_v18, %v4034_v26 }
 0x127   :  { %v391_v28 = vpop.f32.mrf.mxu0  ;;  %v464_v32 = vpop.f32.mrf.mxu1 }
 0x128   :  { %4454 = vst [vmem:[#allocation20_spill] sm:$0xff] %v4061_v22  ;;  %4455 = vst [vmem:[#allocation21_spill] sm:$0xff] %v4064_v27  ;;  %v4066_v33 = vadd.f32 %v391_v28, %v136_v25  ;;  %v4069_v44 = vadd.f32 %v464_v32, %v4028_v21 }
 0x129   :  { %v393_v53 = vpop.f32.mrf.mxu0  ;;  %v466_v2 = vpop.f32.mrf.mxu1 }
 0x12a   :  { %4456 = vst [vmem:[#allocation22_spill] sm:$0xff] %v4066_v33  ;;  %4457 = vst [vmem:[#allocation23_spill] sm:$0xff] %v4069_v44  ;;  %v4071_v10 = vadd.f32 %v393_v53, %v140_v29  ;;  %v4074_v13 = vadd.f32 %v466_v2, %v4034_v26 }
 0x12b   :  { %v395_v14 = vpop.f32.mrf.mxu0  ;;  %v468_v17 = vpop.f32.mrf.mxu1 }
 0x12c   :  { %4458 = vst [vmem:[#allocation24_spill] sm:$0xff] %v4071_v10  ;;  %4459 = vst [vmem:[#allocation25_spill] sm:$0xff] %v4074_v13  ;;  %v4076_v0 = vadd.f32 %v395_v14, %v136_v25  ;;  %v4079_v18 = vadd.f32 %v468_v17, %v4028_v21 }
 0x12d   :  { %v397_v16 = vpop.f32.mrf.mxu0  ;;  %v470_v28 = vpop.f32.mrf.mxu1 }
 0x12e   :  { %4460 = vst [vmem:[#allocation26_spill] sm:$0xff] %v4076_v0  ;;  %4461 = vst [vmem:[#allocation27_spill] sm:$0xff] %v4079_v18  ;;  %v4081_v33 = vadd.f32 %v397_v16, %v140_v29  ;;  %v4084_v32 = vadd.f32 %v470_v28, %v4034_v26 }
 0x12f   :  { %v401_v44 = vpop.f32.mrf.mxu0  ;;  %v474_v53 = vpop.f32.mrf.mxu1 }
 0x130   :  { %4462 = vst [vmem:[#allocation28_spill] sm:$0xff] %v4081_v33  ;;  %4463 = vst [vmem:[#allocation29_spill] sm:$0xff] %v4084_v32  ;;  %v4086_v10 = vadd.f32 %v401_v44, %v136_v25  ;;  %v4089_v2 = vadd.f32 %v474_v53, %v4028_v21 }
 0x131   :  { %v403_v13 = vpop.f32.mrf.mxu0  ;;  %v476_v14 = vpop.f32.mrf.mxu1 }
 0x132   :  { %4464 = vst [vmem:[#allocation30_spill] sm:$0xff] %v4086_v10  ;;  %4465 = vst [vmem:[#allocation31_spill] sm:$0xff] %v4089_v2  ;;  %v4091_v0 = vadd.f32 %v403_v13, %v140_v29  ;;  %v4094_v17 = vadd.f32 %v476_v14, %v4034_v26  ;;  %v372_v10 = vadd.f32 %v4024_v19, %v136_v25 }
 0x133   :  { %v405_v18 = vpop.f32.mrf.mxu0  ;;  %v478_v16 = vpop.f32.mrf.mxu1  ;;  %v374_v14 = vadd.f32 %v4030_v23, %v140_v29 }
 0x134   :  { %4466 = vst [vmem:[#allocation32_spill] sm:$0xff] %v4091_v0  ;;  %4467 = vst [vmem:[#allocation33_spill] sm:$0xff] %v4094_v17  ;;  %v4096_v33 = vadd.f32 %v405_v18, %v136_v25  ;;  %v4099_v28 = vadd.f32 %v478_v16, %v4028_v21  ;;  %v447_v25 = vadd.f32 %v4032_v24, %v4034_v26 }
 0x135   :  { %v407_v32 = vpop.f32.mrf.mxu0  ;;  %v480_v44 = vpop.f32.mrf.mxu1 }
 0x136   :  { %4468 = vst [vmem:[#allocation34_spill] sm:$0xff] %v4096_v33  ;;  %4469 = vst [vmem:[#allocation35_spill] sm:$0xff] %v4099_v28  ;;  %v4102_v53 = vadd.f32 %v407_v32, %v140_v29  ;;  %v4105_v2 = vadd.f32 %v480_v44, %v4034_v26  ;;  %v445_v44 = vadd.f32 %v4026_v20, %v4028_v21 }
 0x137   :  { %v712_v13 = vpop.f32.mrf.mxu0  ;;  %v753_v0 = vpop.f32.mrf.mxu1 }
 0x138   :  { %v760_v17 = vadd.f32 %v712_v13, %v372_v10  ;;  %v762_v10 = vadd.f32 %v753_v0, %v445_v44 }
 0x139   :  { %v714_v27 = vpop.f32.mrf.mxu0  ;;  %v755_v18 = vpop.f32.mrf.mxu1 }
 0x13a   :  { %v3100_v33 = vmul.f32 -1.442695, %v760_v17  ;;  %v761_v22 = vadd.f32 %v714_v27, %v374_v14  ;;  %v763_v32 = vadd.f32 %v755_v18, %v447_v25 }
 0x13b   :  { %v716_v16 = vpop.f32.mrf.mxu0  ;;  %v757_v28 = vpop.f32.mrf.mxu1 }
 0x13c   :  { %3556 = vpow2.f32 %v3100_v33  ;;  %v3101_v15 = vmul.f32 -1.442695, %v761_v22  ;;  %v3102_v23 = vmul.f32 -1.442695, %v763_v32  ;;  %v795_v28 = vpop.permute.xlu0 %794 }
 0x13d   :  { %v717_v1 = vpop.f32.mrf.mxu0  ;;  %v758_v19 = vpop.f32.mrf.mxu1  ;;  %vm796_vm4 = vcmp.eq.s32.totalorder %v795_v28, 1  ;;  %v4191_v28 = vld [vmem:[#allocation10 + $0xc8] ss:$16 sps:$4 sm:$0xff]  }
 0x13e   :  { %3558 = vpow2.f32 %v3101_v15  ;;  %v87_v15 = vld [vmem:[#allocation7] sm:$0xff] }
 0x13f   :  { %3560 = vpow2.f32 %v3102_v23  ;;  %v4470_v23 = vmov 0  }
 0x149   :  { %v3557_v29 = vpop.eup %3556 }
 0x14a   :  { %v767_v13 = vadd.f32 1.0, %v3557_v29 }
 0x14b   :  { %v3559_v17 = vpop.eup %3558 }
 0x14c   :  { %3562 = vrcp.f32 %v767_v13  ;;  %v773_v27 = vadd.f32 1.0, %v3559_v17  ;;  %v3561_v1 = vpop.eup %3560  ;;  %v4172_v13 = vld [vmem:[#allocation10 + $0xe0] ss:$16 sps:$4 sm:$0xff]   ;;  %v4174_v17 = vld [vmem:[#allocation10 + $0xe4] ss:$16 sps:$4 sm:$0xff]  }
 0x14d   :  { %3564 = vtanh.f32 %v762_v10  ;;  %v780_v26 = vadd.f32 1.0, %v3561_v1  ;;  %v4178_v1 = vld [vmem:[#allocation10 + $0xec] ss:$16 sps:$4 sm:$0xff]  }
 0x14e   :  { %3566 = vrcp.f32 %v773_v27  ;;  %v4176_v27 = vld [vmem:[#allocation10 + $0xe8] ss:$16 sps:$4 sm:$0xff]  }
 0x14f   :  { %3568 = vrcp.f32 %v780_v26  ;;  %v4196_v26 = vld [vmem:[#allocation10 + $0xac] ss:$16 sps:$4 sm:$0xff]  }
 0x159   :  { %v3563_v22 = vpop.eup %3562 }
 0x15a   :  { %v3565_v33 = vpop.eup %3564 }
 0x15b   :  { %v3567_v24 = vpop.eup %3566  ;;  %v784_v18 = vmul.f32 %v3565_v33, %v3563_v22  ;;  %v4180_v22 = vld [vmem:[#allocation10 + $0xc4] ss:$16 sps:$4 sm:$0xff]   ;;  %v4187_v33 = vld [vmem:[#allocation10 + $0xc0] ss:$16 sps:$4 sm:$0xff]  }
 0x15c   :  { %v783_v14 = vmul.f32 %v3567_v24, %v87_v15  ;;  %v3569_v21 = vpop.eup %3568  ;;  %v4193_v24 = vld [vmem:[#allocation10 + $0xa4] ss:$16 sps:$4 sm:$0xff]  }
 0x15e   :  { %v785_v20 = vadd.f32 %v784_v18, %v783_v14  ;;  %v4199_v14 = vld [vmem:[#allocation10 + $0xa0] ss:$16 sps:$4 sm:$0xff]   ;;  %v4203_v18 = vld [vmem:[#allocation10 + $0xa8] ss:$16 sps:$4 sm:$0xff]  }
 0x160   :  { %3570 = vtanh.f32 %v785_v20  ;;  %v4112_v0 = vsel %vm796_vm4, %v785_v20, %v87_v15  ;;  %v4183_v15 = vld [vmem:[#allocation10 + $0xcc] ss:$16 sps:$4 sm:$0xff]   ;;  %v4208_v20 = vld [vmem:[#allocation10 + $0x84] ss:$16 sps:$4 sm:$0xff]  }
 0x16d   :  { %v3571_v16 = vpop.eup %3570 }
 0x16e   :  { %v787_v19 = vmul.f32 %v3571_v16, %v3569_v21  ;;  %v4212_v21 = vld [vmem:[#allocation10 + $0x80] ss:$16 sps:$4 sm:$0xff]   ;;  %v4214_v16 = vld [vmem:[#allocation10 + $0x88] ss:$16 sps:$4 sm:$0xff]  }
 0x170   :  { %v788_v25 = vpack.c.bf16 %v787_v19, %v787_v19  ;;  %v4115_v32 = vsel %vm796_vm4, %v787_v19, %v3970_v9  ;;  %v4220_v19 = vld [vmem:[#allocation10 + $0x64] ss:$16 sps:$4 sm:$0xff]  }
 0x171   :  { %v799_v44 = vpack.c.bf16 %v4115_v32, %v4115_v32 }
 0x172   :  { %789 = vst [vmem:[#allocation12] sm:$0xf] %v788_v25  ;;  %v4222_v25 = vld [vmem:[#allocation10 + $0x6c] ss:$16 sps:$4 sm:$0xff]  }
 0x173   :  { %1025 = vmatmul.mubr.bf16.vlgmr.msra.gmra.mxu0 %v799_v44  ;;  %1066 = vmatmul.mubr.bf16.vlgmr.msra.gmra.mxu1 %v799_v44  ;;  %v4226_v44 = vld [vmem:[#allocation10 + $0x68] ss:$16 sps:$4 sm:$0xff]  }
 0x174   :  { %1309 = vmatpush1.bf16.msra.mxu0 %v3865_v36  ;;  %1350 = vmatpush1.bf16.msra.mxu1 %v3867_v37  ;;  %v1424_v36 = vsel %vm1423_vm5, 1, %v4470_v23  ;;  %v1740_v37 = vsel %vm1739_vm6, 1, %v4470_v23 }
 0x175   :  { %1310 = vmatprep.subr.bf16.mxu0 %v3871_v38  ;;  %1351 = vmatprep.subr.bf16.mxu1 %v3873_v39  ;;  %v2372_v38 = vsel %vm2371_vm7, 1, %v4470_v23 }
 0x176   :  { %1340 = vmatprep.mubr.bf16.mxu0 %v4470_v23  ;;  %1381 = vmatprep.mubr.bf16.mxu1 %v4470_v23 }
 0x177   :  { %1426 = vperm.xlu1 %3359, %v1424_v36   ;;  %v4232_v36 = vld [vmem:[#allocation10 + $0x44] ss:$16 sps:$4 sm:$0xff]  }
 0x178   :  { %1311 = vmatpush1.bf16.msra.mxu0 %v3875_v40  ;;  %1352 = vmatpush1.bf16.msra.mxu1 %v3879_v41 }
 0x179   :  { %1312 = vmatprep.subr.bf16.mxu0 %v3883_v42  ;;  %1353 = vmatprep.subr.bf16.mxu1 %v3885_v43 }
 0x17b   :  { %1742 = vperm.xlu1 %3359, %v1740_v37   ;;  %v4234_v37 = vld [vmem:[#allocation10 + $0x4c] ss:$16 sps:$4 sm:$0xff]  }
 0x17c   :  { %1313 = vmatpush1.bf16.msra.mxu0 %v3889_v45  ;;  %1354 = vmatpush1.bf16.msra.mxu1 %v3891_v46 }
 0x17d   :  { %1314 = vmatprep.subr.bf16.mxu0 %v3895_v47  ;;  %1355 = vmatprep.subr.bf16.mxu1 %v3899_v48 }
 0x17f   :  { %2374 = vperm.xlu1 %3359, %v2372_v38   ;;  %v4236_v38 = vld [vmem:[#allocation10 + $0x40] ss:$16 sps:$4 sm:$0xff]  }
 0x180   :  { %1315 = vmatpush1.bf16.msra.mxu0 %v3901_v49  ;;  %1356 = vmatpush1.bf16.msra.mxu1 %v3903_v50 }
 0x181   :  { %1316 = vmatprep.subr.bf16.mxu0 %v3907_v51  ;;  %1357 = vmatprep.subr.bf16.mxu1 %v3911_v52 }
 0x184   :  { %1317 = vmatpush1.bf16.msra.mxu0 %v3915_v54  ;;  %1358 = vmatpush1.bf16.msra.mxu1 %v3917_v55 }
 0x185   :  { %1318 = vmatprep.subr.bf16.mxu0 %v3926_v57  ;;  %1359 = vmatprep.subr.bf16.mxu1 %v3931_v58 }
 0x188   :  { %1319 = vmatpush1.bf16.msra.mxu0 %v3935_v60  ;;  %1360 = vmatpush1.bf16.msra.mxu1 %v3937_v61 }
 0x189   :  { %1320 = vmatprep.subr.bf16.mxu0 %v3939_v62  ;;  %1361 = vmatprep.subr.bf16.mxu1 %v3941_v63 }
 0x18c   :  { %1321 = vmatpush1.bf16.msra.mxu0 %v3950_v3  ;;  %1362 = vmatpush1.bf16.msra.mxu1 %v3952_v4 }
 0x18d   :  { %1322 = vmatprep.subr.bf16.mxu0 %v3954_v5  ;;  %1363 = vmatprep.subr.bf16.mxu1 %v3956_v6 }
 0x190   :  { %1323 = vmatpush1.bf16.msra.mxu0 %v3963_v7  ;;  %1364 = vmatpush1.bf16.msra.mxu1 %v3965_v8  ;;  %v1111_v7 = vpop.permute.xlu0 %1110 }
 0x191   :  { %vm1112_vm8 = vcmp.eq.s32.totalorder %v1111_v7, 1  ;;  %1624 = vmatprep.subr.bf16.mxu0 %v4174_v17  ;;  %1665 = vmatprep.subr.bf16.mxu1 %v4178_v1 }
 0x233   :  { %v1026_v39 = vpop.f32.mrf.mxu0  ;;  %v1067_v40 = vpop.f32.mrf.mxu1 }
 0x234   :  { %v1074_v41 = vadd.f32 %v1026_v39, %v4036_v30  ;;  %v1076_v54 = vadd.f32 %v1067_v40, %v4039_v31  ;;  %v4238_v39 = vld [vmem:[#allocation10 + $0x48] ss:$16 sps:$4 sm:$0xff]   ;;  %v4244_v40 = vld [vmem:[#allocation10 + $0x24] ss:$16 sps:$4 sm:$0xff]  }
 0x235   :  { %v1028_v42 = vpop.f32.mrf.mxu0  ;;  %v1069_v43 = vpop.f32.mrf.mxu1 }
 0x236   :  { %v3135_v45 = vmul.f32 -1.442695, %v1074_v41  ;;  %v1075_v46 = vadd.f32 %v1028_v42, %v4041_v34  ;;  %v1077_v52 = vadd.f32 %v1069_v43, %v4044_v35  ;;  %v4246_v41 = vld [vmem:[#allocation10 + $0x2c] ss:$16 sps:$4 sm:$0xff]   ;;  %v4248_v42 = vld [vmem:[#allocation10 + $0x20] ss:$16 sps:$4 sm:$0xff]  }
 0x237   :  { %v1030_v47 = vpop.f32.mrf.mxu0  ;;  %v1071_v48 = vpop.f32.mrf.mxu1  ;;  %v4250_v43 = vld [vmem:[#allocation10 + $0x28] ss:$16 sps:$4 sm:$0xff]  }
 0x238   :  { %3572 = vpow2.f32 %v3135_v45  ;;  %v3136_v49 = vmul.f32 -1.442695, %v1075_v46  ;;  %v3137_v55 = vmul.f32 -1.442695, %v1077_v52  ;;  %v4256_v45 = vld [vmem:[#allocation10 + $0x4] ss:$16 sps:$4 sm:$0xff]  }
 0x239   :  { %v1031_v50 = vpop.f32.mrf.mxu0  ;;  %v1072_v51 = vpop.f32.mrf.mxu1  ;;  %v4258_v46 = vld [vmem:[#allocation10 + $0xc] ss:$16 sps:$4 sm:$0xff]   ;;  %v4260_v47 = vld [vmem:[#allocation10] ss:$16 sps:$4 sm:$0xff]   ;;  %v4262_v48 = vld [vmem:[#allocation10 + $0x8] ss:$16 sps:$4 sm:$0xff]  }
 0x23a   :  { %3574 = vpow2.f32 %v3136_v49 }
 0x23b   :  { %3576 = vtanh.f32 %v1076_v54 }
 0x23c   :  { %3578 = vpow2.f32 %v3137_v55 }
 0x245   :  { %v3573_v56 = vpop.eup %3572 }
 0x246   :  { %v1081_v57 = vadd.f32 1.0, %v3573_v56 }
 0x247   :  { %v3575_v58 = vpop.eup %3574 }
 0x248   :  { %3580 = vrcp.f32 %v1081_v57  ;;  %v1087_v60 = vadd.f32 1.0, %v3575_v58  ;;  %v3577_v61 = vpop.eup %3576 }
 0x249   :  { %v3579_v62 = vpop.eup %3578 }
 0x24a   :  { %3582 = vrcp.f32 %v1087_v60  ;;  %v1094_v5 = vadd.f32 1.0, %v3579_v62 }
 0x24c   :  { %3584 = vrcp.f32 %v1094_v5 }
 0x255   :  { %v3581_v63 = vpop.eup %3580 }
 0x256   :  { %v1098_v3 = vmul.f32 %v3581_v63, %v3577_v61 }
 0x257   :  { %v3583_v4 = vpop.eup %3582 }
 0x258   :  { %v1097_v6 = vmul.f32 %v3583_v4, %v4112_v0 }
 0x259   :  { %v3585_v30 = vpop.eup %3584 }
 0x25a   :  { %v1099_v8 = vadd.f32 %v1098_v3, %v1097_v6  ;;  %v4471_v3 = vld [vmem:[#allocation17_spill] sm:$0xff] }
 0x25c   :  { %3586 = vtanh.f32 %v1099_v8  ;;  %v4163_v9 = vsel %vm1112_vm8, %v1099_v8, %v4112_v0  ;;  %v4210_v0 = vld [vmem:[#allocation10 + $0x8c] ss:$16 sps:$4 sm:$0xff]  }
 0x269   :  { %v3587_v31 = vpop.eup %3586 }
 0x26a   :  { %v1101_v34 = vmul.f32 %v3587_v31, %v3585_v30 }
 0x26c   :  { %v1102_v35 = vpack.c.bf16 %v1101_v34, %v1101_v34  ;;  %v4166_v29 = vsel %vm1112_vm8, %v1101_v34, %v4115_v32  ;;  %v4224_v32 = vld [vmem:[#allocation10 + $0x60] ss:$16 sps:$4 sm:$0xff]   ;;  %v1427_v34 = vpop.permute.xlu1 %1426 }
 0x26d   :  { %v1115_v10 = vpack.c.bf16 %v4166_v29, %v4166_v29  ;;  %vm1428_vm9 = vcmp.eq.s32.totalorder %v1427_v34, 1  ;;  %v4475_v34 = vld [vmem:[#allocation19_spill] sm:$0xff] }
 0x26e   :  { %1104 = vst [vmem:[#allocation12 + $0x4] sm:$0xf] %v1102_v35 }
 0x26f   :  { %1341 = vmatmul.mubr.bf16.vlgmr.msra.gmra.mxu0 %v1115_v10  ;;  %1382 = vmatmul.mubr.bf16.vlgmr.msra.gmra.mxu1 %v1115_v10 }
 0x270   :  { %1656 = vmatprep.mubr.bf16.mxu0 %v4470_v23  ;;  %1697 = vmatprep.mubr.bf16.mxu1 %v4470_v23 }
 0x271   :  { %1625 = vmatpush1.bf16.msra.mxu0 %v4172_v13  ;;  %1666 = vmatpush1.bf16.msra.mxu1 %v4176_v27 }
 0x272   :  { %1626 = vmatprep.subr.bf16.mxu0 %v4180_v22  ;;  %1667 = vmatprep.subr.bf16.mxu1 %v4183_v15 }
 0x275   :  { %1627 = vmatpush1.bf16.msra.mxu0 %v4187_v33  ;;  %1668 = vmatpush1.bf16.msra.mxu1 %v4191_v28 }
 0x276   :  { %1628 = vmatprep.subr.bf16.mxu0 %v4193_v24  ;;  %1669 = vmatprep.subr.bf16.mxu1 %v4196_v26 }
 0x279   :  { %1629 = vmatpush1.bf16.msra.mxu0 %v4199_v14  ;;  %1670 = vmatpush1.bf16.msra.mxu1 %v4203_v18 }
 0x27a   :  { %1630 = vmatprep.subr.bf16.mxu0 %v4208_v20  ;;  %1671 = vmatprep.subr.bf16.mxu1 %v4210_v0 }
 0x27d   :  { %1631 = vmatpush1.bf16.msra.mxu0 %v4212_v21  ;;  %1672 = vmatpush1.bf16.msra.mxu1 %v4214_v16 }
 0x27e   :  { %1632 = vmatprep.subr.bf16.mxu0 %v4220_v19  ;;  %1673 = vmatprep.subr.bf16.mxu1 %v4222_v25 }
 0x281   :  { %1633 = vmatpush1.bf16.msra.mxu0 %v4224_v32  ;;  %1674 = vmatpush1.bf16.msra.mxu1 %v4226_v44 }
 0x282   :  { %1634 = vmatprep.subr.bf16.mxu0 %v4232_v36  ;;  %1675 = vmatprep.subr.bf16.mxu1 %v4234_v37 }
 0x285   :  { %1635 = vmatpush1.bf16.msra.mxu0 %v4236_v38  ;;  %1676 = vmatpush1.bf16.msra.mxu1 %v4238_v39 }
 0x286   :  { %1636 = vmatprep.subr.bf16.mxu0 %v4244_v40  ;;  %1677 = vmatprep.subr.bf16.mxu1 %v4246_v41 }
 0x289   :  { %1637 = vmatpush1.bf16.msra.mxu0 %v4248_v42  ;;  %1678 = vmatpush1.bf16.msra.mxu1 %v4250_v43 }
 0x28a   :  { %1638 = vmatprep.subr.bf16.mxu0 %v4256_v45  ;;  %1679 = vmatprep.subr.bf16.mxu1 %v4258_v46 }
 0x28d   :  { %1639 = vmatpush1.bf16.msra.mxu0 %v4260_v47  ;;  %1680 = vmatpush1.bf16.msra.mxu1 %v4262_v48 }
 0x28e   :  { %1940 = vmatprep.subr.bf16.mxu0 %v4174_v17  ;;  %1981 = vmatprep.subr.bf16.mxu1 %v4178_v1 }
 0x32f   :  { %v1342_v49 = vpop.f32.mrf.mxu0  ;;  %v1383_v50 = vpop.f32.mrf.mxu1 }
 0x330   :  { %v1390_v51 = vadd.f32 %v1342_v49, %v4046_v59  ;;  %v1392_v4 = vadd.f32 %v1383_v50, %v4471_v3 }
 0x331   :  { %v1344_v52 = vpop.f32.mrf.mxu0  ;;  %v1385_v54 = vpop.f32.mrf.mxu1 }
 0x332   :  { %v3170_v55 = vmul.f32 -1.442695, %v1390_v51  ;;  %v1391_v56 = vadd.f32 %v1344_v52, %v4051_v11  ;;  %v1393_v63 = vadd.f32 %v1385_v54, %v4054_v12 }
 0x333   :  { %v1346_v57 = vpop.f32.mrf.mxu0  ;;  %v1387_v58 = vpop.f32.mrf.mxu1 }
 0x334   :  { %3588 = vpow2.f32 %v3170_v55  ;;  %v3171_v60 = vmul.f32 -1.442695, %v1391_v56  ;;  %v3172_v5 = vmul.f32 -1.442695, %v1393_v63 }
 0x335   :  { %v1347_v61 = vpop.f32.mrf.mxu0  ;;  %v1388_v62 = vpop.f32.mrf.mxu1 }
 0x336   :  { %3590 = vpow2.f32 %v3171_v60  ;;  %v4472_v60 = vld [vmem:[#allocation18_spill] sm:$0xff] }
 0x337   :  { %3592 = vtanh.f32 %v1392_v4  ;;  %v4473_v4 = vld [vmem:[#allocation20_spill] sm:$0xff] }
 0x338   :  { %3594 = vpow2.f32 %v3172_v5 }
 0x341   :  { %v3589_v6 = vpop.eup %3588 }
 0x342   :  { %v1397_v7 = vadd.f32 1.0, %v3589_v6 }
 0x343   :  { %v3591_v59 = vpop.eup %3590 }
 0x344   :  { %3596 = vrcp.f32 %v1397_v7  ;;  %v1403_v8 = vadd.f32 1.0, %v3591_v59  ;;  %v3593_v11 = vpop.eup %3592 }
 0x345   :  { %v3595_v30 = vpop.eup %3594 }
 0x346   :  { %3598 = vrcp.f32 %v1403_v8  ;;  %v1410_v49 = vadd.f32 1.0, %v3595_v30  ;;  %v4474_v30 = vld [vmem:[#allocation21_spill] sm:$0xff] }
 0x348   :  { %3600 = vrcp.f32 %v1410_v49 }
 0x351   :  { %v3597_v31 = vpop.eup %3596 }
 0x352   :  { %v1414_v35 = vmul.f32 %v3597_v31, %v3593_v11 }
 0x353   :  { %v3599_v10 = vpop.eup %3598 }
 0x354   :  { %v1413_v12 = vmul.f32 %v3599_v10, %v4163_v9 }
 0x355   :  { %v3601_v52 = vpop.eup %3600 }
 0x356   :  { %v1415_v50 = vadd.f32 %v1414_v35, %v1413_v12 }
 0x358   :  { %3602 = vtanh.f32 %v1415_v50  ;;  %v4276_v51 = vsel %vm1428_vm9, %v1415_v50, %v4163_v9 }
 0x365   :  { %v3603_v54 = vpop.eup %3602 }
 0x366   :  { %v1417_v55 = vmul.f32 %v3603_v54, %v3601_v52 }
 0x368   :  { %v1418_v56 = vpack.c.bf16 %v1417_v55, %v1417_v55  ;;  %v4279_v57 = vsel %vm1428_vm9, %v1417_v55, %v4166_v29 }
 0x369   :  { %v1431_v58 = vpack.c.bf16 %v4279_v57, %v4279_v57 }
 0x36a   :  { %1420 = vst [vmem:[#allocation12 + $0x8] sm:$0xf] %v1418_v56 }
 0x36b   :  { %1657 = vmatmul.mubr.bf16.vlgmr.msra.gmra.mxu0 %v1431_v58  ;;  %1698 = vmatmul.mubr.bf16.vlgmr.msra.gmra.mxu1 %v1431_v58 }
 0x36c   :  { %1941 = vmatpush1.bf16.msra.mxu0 %v4172_v13  ;;  %1982 = vmatpush1.bf16.msra.mxu1 %v4176_v27 }
 0x36d   :  { %1942 = vmatprep.subr.bf16.mxu0 %v4180_v22  ;;  %1983 = vmatprep.subr.bf16.mxu1 %v4183_v15 }
 0x36e   :  { %1972 = vmatprep.mubr.bf16.mxu0 %v4470_v23  ;;  %2013 = vmatprep.mubr.bf16.mxu1 %v4470_v23 }
 0x370   :  { %1943 = vmatpush1.bf16.msra.mxu0 %v4187_v33  ;;  %1984 = vmatpush1.bf16.msra.mxu1 %v4191_v28 }
 0x371   :  { %1944 = vmatprep.subr.bf16.mxu0 %v4193_v24  ;;  %1985 = vmatprep.subr.bf16.mxu1 %v4196_v26 }
 0x374   :  { %1945 = vmatpush1.bf16.msra.mxu0 %v4199_v14  ;;  %1986 = vmatpush1.bf16.msra.mxu1 %v4203_v18 }
 0x375   :  { %1946 = vmatprep.subr.bf16.mxu0 %v4208_v20  ;;  %1987 = vmatprep.subr.bf16.mxu1 %v4210_v0 }
 0x378   :  { %1947 = vmatpush1.bf16.msra.mxu0 %v4212_v21  ;;  %1988 = vmatpush1.bf16.msra.mxu1 %v4214_v16 }
 0x379   :  { %1948 = vmatprep.subr.bf16.mxu0 %v4220_v19  ;;  %1989 = vmatprep.subr.bf16.mxu1 %v4222_v25 }
 0x37c   :  { %1949 = vmatpush1.bf16.msra.mxu0 %v4224_v32  ;;  %1990 = vmatpush1.bf16.msra.mxu1 %v4226_v44 }
 0x37d   :  { %1950 = vmatprep.subr.bf16.mxu0 %v4232_v36  ;;  %1991 = vmatprep.subr.bf16.mxu1 %v4234_v37 }
 0x380   :  { %1951 = vmatpush1.bf16.msra.mxu0 %v4236_v38  ;;  %1992 = vmatpush1.bf16.msra.mxu1 %v4238_v39 }
 0x381   :  { %1952 = vmatprep.subr.bf16.mxu0 %v4244_v40  ;;  %1993 = vmatprep.subr.bf16.mxu1 %v4246_v41 }
 0x384   :  { %1953 = vmatpush1.bf16.msra.mxu0 %v4248_v42  ;;  %1994 = vmatpush1.bf16.msra.mxu1 %v4250_v43 }
 0x385   :  { %1954 = vmatprep.subr.bf16.mxu0 %v4256_v45  ;;  %1995 = vmatprep.subr.bf16.mxu1 %v4258_v46 }
 0x388   :  { %1955 = vmatpush1.bf16.msra.mxu0 %v4260_v47  ;;  %1996 = vmatpush1.bf16.msra.mxu1 %v4262_v48 }
 0x389   :  { %2256 = vmatprep.subr.bf16.mxu0 %v4174_v17  ;;  %2297 = vmatprep.subr.bf16.mxu1 %v4178_v1 }
 0x42b   :  { %v1658_v9 = vpop.f32.mrf.mxu0  ;;  %v1699_v29 = vpop.f32.mrf.mxu1 }
 0x42c   :  { %v1706_v61 = vadd.f32 %v1658_v9, %v4472_v60  ;;  %v1708_v35 = vadd.f32 %v1699_v29, %v4475_v34 }
 0x42d   :  { %v1660_v62 = vpop.f32.mrf.mxu0  ;;  %v1701_v63 = vpop.f32.mrf.mxu1 }
 0x42e   :  { %v3205_v3 = vmul.f32 -1.442695, %v1706_v61  ;;  %v1707_v5 = vadd.f32 %v1660_v62, %v4473_v4  ;;  %v1709_v31 = vadd.f32 %v1701_v63, %v4474_v30  ;;  %v1743_v62 = vpop.permute.xlu1 %1742 }
 0x42f   :  { %v1662_v6 = vpop.f32.mrf.mxu0  ;;  %v1703_v7 = vpop.f32.mrf.mxu1  ;;  %vm1744_vm10 = vcmp.eq.s32.totalorder %v1743_v62, 1 }
 0x430   :  { %3604 = vpow2.f32 %v3205_v3  ;;  %v3206_v59 = vmul.f32 -1.442695, %v1707_v5  ;;  %v3207_v10 = vmul.f32 -1.442695, %v1709_v31 }
 0x431   :  { %v1663_v8 = vpop.f32.mrf.mxu0  ;;  %v1704_v11 = vpop.f32.mrf.mxu1 }
 0x432   :  { %3606 = vpow2.f32 %v3206_v59  ;;  %v4476_v8 = vld [vmem:[#allocation22_spill] sm:$0xff] }
 0x433   :  { %3608 = vtanh.f32 %v1708_v35  ;;  %v4477_v35 = vld [vmem:[#allocation24_spill] sm:$0xff] }
 0x434   :  { %3610 = vpow2.f32 %v3207_v10 }
 0x43d   :  { %v3605_v49 = vpop.eup %3604 }
 0x43e   :  { %v1713_v12 = vadd.f32 1.0, %v3605_v49 }
 0x43f   :  { %v3607_v50 = vpop.eup %3606 }
 0x440   :  { %3612 = vrcp.f32 %v1713_v12  ;;  %v1719_v52 = vadd.f32 1.0, %v3607_v50  ;;  %v3609_v54 = vpop.eup %3608 }
 0x441   :  { %v3611_v55 = vpop.eup %3610 }
 0x442   :  { %3614 = vrcp.f32 %v1719_v52  ;;  %v1726_v60 = vadd.f32 1.0, %v3611_v55  ;;  %v4478_v55 = vld [vmem:[#allocation25_spill] sm:$0xff] }
 0x444   :  { %3616 = vrcp.f32 %v1726_v60 }
 0x44d   :  { %v3613_v56 = vpop.eup %3612 }
 0x44e   :  { %v1730_v58 = vmul.f32 %v3613_v56, %v3609_v54  ;;  %v4479_v56 = vld [vmem:[#allocation23_spill] sm:$0xff] }
 0x44f   :  { %v3615_v9 = vpop.eup %3614 }
 0x450   :  { %v1729_v61 = vmul.f32 %v3615_v9, %v4276_v51 }
 0x451   :  { %v3617_v3 = vpop.eup %3616 }
 0x452   :  { %v1731_v63 = vadd.f32 %v1730_v58, %v1729_v61 }
 0x454   :  { %3618 = vtanh.f32 %v1731_v63  ;;  %v4323_v29 = vsel %vm1744_vm10, %v1731_v63, %v4276_v51 }
 0x461   :  { %v3619_v4 = vpop.eup %3618 }
 0x462   :  { %v1733_v5 = vmul.f32 %v3619_v4, %v3617_v3 }
 0x464   :  { %v1734_v6 = vpack.c.bf16 %v1733_v5, %v1733_v5  ;;  %v4326_v7 = vsel %vm1744_vm10, %v1733_v5, %v4279_v57 }
 0x465   :  { %v1747_v59 = vpack.c.bf16 %v4326_v7, %v4326_v7 }
 0x466   :  { %1736 = vst [vmem:[#allocation12 + $0xc] sm:$0xf] %v1734_v6 }
 0x467   :  { %1973 = vmatmul.mubr.bf16.vlgmr.msra.gmra.mxu0 %v1747_v59  ;;  %2014 = vmatmul.mubr.bf16.vlgmr.msra.gmra.mxu1 %v1747_v59 }
 0x468   :  { %2257 = vmatpush1.bf16.msra.mxu0 %v4172_v13  ;;  %2298 = vmatpush1.bf16.msra.mxu1 %v4176_v27 }
 0x469   :  { %2258 = vmatprep.subr.bf16.mxu0 %v4180_v22  ;;  %2299 = vmatprep.subr.bf16.mxu1 %v4183_v15 }
 0x46a   :  { %2288 = vmatprep.mubr.bf16.mxu0 %v4470_v23  ;;  %2329 = vmatprep.mubr.bf16.mxu1 %v4470_v23 }
 0x46c   :  { %2259 = vmatpush1.bf16.msra.mxu0 %v4187_v33  ;;  %2300 = vmatpush1.bf16.msra.mxu1 %v4191_v28 }
 0x46d   :  { %2260 = vmatprep.subr.bf16.mxu0 %v4193_v24  ;;  %2301 = vmatprep.subr.bf16.mxu1 %v4196_v26 }
 0x470   :  { %2261 = vmatpush1.bf16.msra.mxu0 %v4199_v14  ;;  %2302 = vmatpush1.bf16.msra.mxu1 %v4203_v18 }
 0x471   :  { %2262 = vmatprep.subr.bf16.mxu0 %v4208_v20  ;;  %2303 = vmatprep.subr.bf16.mxu1 %v4210_v0 }
 0x474   :  { %2263 = vmatpush1.bf16.msra.mxu0 %v4212_v21  ;;  %2304 = vmatpush1.bf16.msra.mxu1 %v4214_v16 }
 0x475   :  { %2264 = vmatprep.subr.bf16.mxu0 %v4220_v19  ;;  %2305 = vmatprep.subr.bf16.mxu1 %v4222_v25 }
 0x478   :  { %2265 = vmatpush1.bf16.msra.mxu0 %v4224_v32  ;;  %2306 = vmatpush1.bf16.msra.mxu1 %v4226_v44 }
 0x479   :  { %2266 = vmatprep.subr.bf16.mxu0 %v4232_v36  ;;  %2307 = vmatprep.subr.bf16.mxu1 %v4234_v37 }
 0x47c   :  { %2267 = vmatpush1.bf16.msra.mxu0 %v4236_v38  ;;  %2308 = vmatpush1.bf16.msra.mxu1 %v4238_v39 }
 0x47d   :  { %2268 = vmatprep.subr.bf16.mxu0 %v4244_v40  ;;  %2309 = vmatprep.subr.bf16.mxu1 %v4246_v41 }
 0x480   :  { %2269 = vmatpush1.bf16.msra.mxu0 %v4248_v42  ;;  %2310 = vmatpush1.bf16.msra.mxu1 %v4250_v43 }
 0x481   :  { %2270 = vmatprep.subr.bf16.mxu0 %v4256_v45  ;;  %2311 = vmatprep.subr.bf16.mxu1 %v4258_v46 }
 0x484   :  { %2271 = vmatpush1.bf16.msra.mxu0 %v4260_v47  ;;  %2312 = vmatpush1.bf16.msra.mxu1 %v4262_v48 }
 0x485   :  { %2572 = vmatprep.subr.bf16.mxu0 %v4174_v17  ;;  %2613 = vmatprep.subr.bf16.mxu1 %v4178_v1 }
 0x527   :  { %v1974_v51 = vpop.f32.mrf.mxu0  ;;  %v2015_v57 = vpop.f32.mrf.mxu1 }
 0x528   :  { %v2022_v11 = vadd.f32 %v1974_v51, %v4476_v8  ;;  %v2024_v1 = vadd.f32 %v2015_v57, %v4479_v56  ;;  %v2059_v8 = vpop.permute.xlu0 %2058 }
 0x529   :  { %v1976_v30 = vpop.f32.mrf.mxu0  ;;  %v2017_v31 = vpop.f32.mrf.mxu1  ;;  %vm2060_vm11 = vcmp.eq.s32.totalorder %v2059_v8, 1  ;;  %v3526_v8 = vld [vmem:[#allocation10 + $0x80] ss:$16 sps:$4 sm:$0xff]  }
 0x52a   :  { %v3240_v34 = vmul.f32 -1.442695, %v2022_v11  ;;  %v2023_v10 = vadd.f32 %v1976_v30, %v4477_v35  ;;  %v2025_v17 = vadd.f32 %v2017_v31, %v4478_v55 }
 0x52b   :  { %v1978_v49 = vpop.f32.mrf.mxu0  ;;  %v2019_v12 = vpop.f32.mrf.mxu1 }
 0x52c   :  { %3620 = vpow2.f32 %v3240_v34  ;;  %v3241_v50 = vmul.f32 -1.442695, %v2023_v10  ;;  %v3242_v58 = vmul.f32 -1.442695, %v2025_v17 }
 0x52d   :  { %v1979_v52 = vpop.f32.mrf.mxu0  ;;  %v2020_v54 = vpop.f32.mrf.mxu1 }
 0x52e   :  { %3622 = vpow2.f32 %v3241_v50 }
 0x52f   :  { %3624 = vtanh.f32 %v2024_v1  ;;  %v3510_v1 = vld [vmem:[#allocation10 + $0xe4] ss:$16 sps:$4 sm:$0xff]  }
 0x530   :  { %3626 = vpow2.f32 %v3242_v58  ;;  %v3513_v58 = vld [vmem:[#allocation10 + $0xec] ss:$16 sps:$4 sm:$0xff]  }
 0x539   :  { %v3621_v9 = vpop.eup %3620 }
 0x53a   :  { %v2029_v60 = vadd.f32 1.0, %v3621_v9  ;;  %v3508_v9 = vld [vmem:[#allocation10 + $0xe0] ss:$16 sps:$4 sm:$0xff]  }
 0x53b   :  { %v3623_v61 = vpop.eup %3622 }
 0x53c   :  { %3628 = vrcp.f32 %v2029_v60  ;;  %v2035_v62 = vadd.f32 1.0, %v3623_v61  ;;  %v3625_v63 = vpop.eup %3624  ;;  %v3511_v60 = vld [vmem:[#allocation10 + $0xe8] ss:$16 sps:$4 sm:$0xff]   ;;  %v3516_v61 = vld [vmem:[#allocation10 + $0xc4] ss:$16 sps:$4 sm:$0xff]  }
 0x53d   :  { %v3627_v3 = vpop.eup %3626 }
 0x53e   :  { %3630 = vrcp.f32 %v2035_v62  ;;  %v2042_v59 = vadd.f32 1.0, %v3627_v3  ;;  %v3519_v62 = vld [vmem:[#allocation10 + $0xcc] ss:$16 sps:$4 sm:$0xff]   ;;  %v3517_v3 = vld [vmem:[#allocation10 + $0xc8] ss:$16 sps:$4 sm:$0xff]  }
 0x540   :  { %3632 = vrcp.f32 %v2042_v59  ;;  %v3528_v59 = vld [vmem:[#allocation10 + $0x84] ss:$16 sps:$4 sm:$0xff]  }
 0x549   :  { %v3629_v4 = vpop.eup %3628 }
 0x54a   :  { %v2046_v5 = vmul.f32 %v3629_v4, %v3625_v63  ;;  %v3514_v63 = vld [vmem:[#allocation10 + $0xc0] ss:$16 sps:$4 sm:$0xff]   ;;  %v3522_v4 = vld [vmem:[#allocation10 + $0xa4] ss:$16 sps:$4 sm:$0xff]  }
 0x54b   :  { %v3631_v6 = vpop.eup %3630 }
 0x54c   :  { %v2045_v51 = vmul.f32 %v3631_v6, %v4323_v29  ;;  %v3520_v6 = vld [vmem:[#allocation10 + $0xa0] ss:$16 sps:$4 sm:$0xff]  }
 0x54d   :  { %v3633_v30 = vpop.eup %3632 }
 0x54e   :  { %v2047_v11 = vadd.f32 %v2046_v5, %v2045_v51  ;;  %v3525_v5 = vld [vmem:[#allocation10 + $0xac] ss:$16 sps:$4 sm:$0xff]  }
 0x54f   :  { %v3531_v51 = vld [vmem:[#allocation10 + $0x8c] ss:$16 sps:$4 sm:$0xff]  }
 0x550   :  { %3634 = vtanh.f32 %v2047_v11  ;;  %v4370_v57 = vsel %vm2060_vm11, %v2047_v11, %v4323_v29  ;;  %v3529_v11 = vld [vmem:[#allocation10 + $0x88] ss:$16 sps:$4 sm:$0xff]  }
 0x55d   :  { %v3635_v31 = vpop.eup %3634 }
 0x55e   :  { %v2049_v34 = vmul.f32 %v3635_v31, %v3633_v30  ;;  %v3532_v30 = vld [vmem:[#allocation10 + $0x60] ss:$16 sps:$4 sm:$0xff]   ;;  %v3535_v31 = vld [vmem:[#allocation10 + $0x68] ss:$16 sps:$4 sm:$0xff]  }
 0x560   :  { %v2050_v35 = vpack.c.bf16 %v2049_v34, %v2049_v34  ;;  %v4373_v10 = vsel %vm2060_vm11, %v2049_v34, %v4326_v7  ;;  %v3537_v34 = vld [vmem:[#allocation10 + $0x6c] ss:$16 sps:$4 sm:$0xff]  }
 0x561   :  { %v2063_v49 = vpack.c.bf16 %v4373_v10, %v4373_v10 }
 0x562   :  { %2052 = vst [vmem:[#allocation12 + $0x10] sm:$0xf] %v2050_v35  ;;  %v3540_v35 = vld [vmem:[#allocation10 + $0x44] ss:$16 sps:$4 sm:$0xff]  }
 0x563   :  { %2289 = vmatmul.mubr.bf16.vlgmr.msra.gmra.mxu0 %v2063_v49  ;;  %2330 = vmatmul.mubr.bf16.vlgmr.msra.gmra.mxu1 %v2063_v49  ;;  %v3538_v49 = vld [vmem:[#allocation10 + $0x40] ss:$16 sps:$4 sm:$0xff]  }
 0x564   :  { %2573 = vmatpush1.bf16.msra.mxu0 %v4172_v13  ;;  %2614 = vmatpush1.bf16.msra.mxu1 %v4176_v27 }
 0x565   :  { %2574 = vmatprep.subr.bf16.mxu0 %v4180_v22  ;;  %2615 = vmatprep.subr.bf16.mxu1 %v4183_v15  ;;  %v4480_v22 = vld [vmem:[#allocation26_spill] sm:$0xff] }
 0x566   :  { %2604 = vmatprep.mubr.bf16.mxu0 %v4470_v23  ;;  %2645 = vmatprep.mubr.bf16.mxu1 %v4470_v23 }
 0x568   :  { %2575 = vmatpush1.bf16.msra.mxu0 %v4187_v33  ;;  %2616 = vmatpush1.bf16.msra.mxu1 %v4191_v28 }
 0x569   :  { %2576 = vmatprep.subr.bf16.mxu0 %v4193_v24  ;;  %2617 = vmatprep.subr.bf16.mxu1 %v4196_v26  ;;  %v4481_v26 = vld [vmem:[#allocation28_spill] sm:$0xff] }
 0x56c   :  { %2577 = vmatpush1.bf16.msra.mxu0 %v4199_v14  ;;  %2618 = vmatpush1.bf16.msra.mxu1 %v4203_v18 }
 0x56d   :  { %2578 = vmatprep.subr.bf16.mxu0 %v4208_v20  ;;  %2619 = vmatprep.subr.bf16.mxu1 %v4210_v0 }
 0x570   :  { %2579 = vmatpush1.bf16.msra.mxu0 %v4212_v21  ;;  %2620 = vmatpush1.bf16.msra.mxu1 %v4214_v16 }
 0x571   :  { %2580 = vmatprep.subr.bf16.mxu0 %v4220_v19  ;;  %2621 = vmatprep.subr.bf16.mxu1 %v4222_v25  ;;  %v4482_v19 = vld [vmem:[#allocation29_spill] sm:$0xff] }
 0x574   :  { %2581 = vmatpush1.bf16.msra.mxu0 %v4224_v32  ;;  %2622 = vmatpush1.bf16.msra.mxu1 %v4226_v44  ;;  %v4483_v32 = vld [vmem:[#allocation27_spill] sm:$0xff] }
 0x575   :  { %2582 = vmatprep.subr.bf16.mxu0 %v4232_v36  ;;  %2623 = vmatprep.subr.bf16.mxu1 %v4234_v37 }
 0x578   :  { %2583 = vmatpush1.bf16.msra.mxu0 %v4236_v38  ;;  %2624 = vmatpush1.bf16.msra.mxu1 %v4238_v39 }
 0x579   :  { %2584 = vmatprep.subr.bf16.mxu0 %v4244_v40  ;;  %2625 = vmatprep.subr.bf16.mxu1 %v4246_v41 }
 0x57c   :  { %2585 = vmatpush1.bf16.msra.mxu0 %v4248_v42  ;;  %2626 = vmatpush1.bf16.msra.mxu1 %v4250_v43 }
 0x57d   :  { %2586 = vmatprep.subr.bf16.mxu0 %v4256_v45  ;;  %2627 = vmatprep.subr.bf16.mxu1 %v4258_v46 }
 0x580   :  { %2587 = vmatpush1.bf16.msra.mxu0 %v4260_v47  ;;  %2628 = vmatpush1.bf16.msra.mxu1 %v4262_v48  ;;  %v2375_v48 = vpop.permute.xlu1 %2374 }
 0x581   :  { %vm2376_vm12 = vcmp.eq.s32.totalorder %v2375_v48, 1  ;;  %2888 = vmatprep.subr.bf16.mxu0 %v3510_v1  ;;  %2929 = vmatprep.subr.bf16.mxu1 %v3513_v58  ;;  %v2691_v58 = vpop.permute.xlu0 %2690 }
 0x582   :  { %vm2692_vm13 = vcmp.eq.s32.totalorder %v2691_v58, 1 }
 0x623   :  { %v2290_v13 = vpop.f32.mrf.mxu0  ;;  %v2331_v27 = vpop.f32.mrf.mxu1 }
 0x624   :  { %v2338_v15 = vadd.f32 %v2290_v13, %v4480_v22  ;;  %v2340_v44 = vadd.f32 %v2331_v27, %v4483_v32  ;;  %v3541_v13 = vld [vmem:[#allocation10 + $0x48] ss:$16 sps:$4 sm:$0xff]   ;;  %v3546_v27 = vld [vmem:[#allocation10 + $0x24] ss:$16 sps:$4 sm:$0xff]   ;;  %v3549_v22 = vld [vmem:[#allocation10 + $0x2c] ss:$16 sps:$4 sm:$0xff]  }
 0x625   :  { %v2292_v33 = vpop.f32.mrf.mxu0  ;;  %v2333_v28 = vpop.f32.mrf.mxu1  ;;  %v4485_v32 = vld [vmem:[#allocation32_spill] sm:$0xff] }
 0x626   :  { %v3275_v24 = vmul.f32 -1.442695, %v2338_v15  ;;  %v2339_v14 = vadd.f32 %v2292_v33, %v4481_v26  ;;  %v2341_v25 = vadd.f32 %v2333_v28, %v4482_v19  ;;  %v3544_v15 = vld [vmem:[#allocation10 + $0x20] ss:$16 sps:$4 sm:$0xff]   ;;  %v3547_v33 = vld [vmem:[#allocation10 + $0x28] ss:$16 sps:$4 sm:$0xff]  }
 0x627   :  { %v2294_v18 = vpop.f32.mrf.mxu0  ;;  %v2335_v20 = vpop.f32.mrf.mxu1  ;;  %v3552_v28 = vld [vmem:[#allocation10 + $0x4] ss:$16 sps:$4 sm:$0xff]   ;;  %v3550_v26 = vld [vmem:[#allocation10] ss:$16 sps:$4 sm:$0xff]  }
 0x628   :  { %3636 = vpow2.f32 %v3275_v24  ;;  %v3276_v0 = vmul.f32 -1.442695, %v2339_v14  ;;  %v3277_v36 = vmul.f32 -1.442695, %v2341_v25  ;;  %v3555_v24 = vld [vmem:[#allocation10 + $0xc] ss:$16 sps:$4 sm:$0xff]  }
 0x629   :  { %v2295_v21 = vpop.f32.mrf.mxu0  ;;  %v2336_v16 = vpop.f32.mrf.mxu1  ;;  %v3553_v14 = vld [vmem:[#allocation10 + $0x8] ss:$16 sps:$4 sm:$0xff]  }
 0x62a   :  { %3638 = vpow2.f32 %v3276_v0  ;;  %v4484_v0 = vld [vmem:[#allocation30_spill] sm:$0xff] }
 0x62b   :  { %3640 = vtanh.f32 %v2340_v44 }
 0x62c   :  { %3642 = vpow2.f32 %v3277_v36 }
 0x635   :  { %v3637_v37 = vpop.eup %3636 }
 0x636   :  { %v2345_v38 = vadd.f32 1.0, %v3637_v37 }
 0x637   :  { %v3639_v39 = vpop.eup %3638 }
 0x638   :  { %3644 = vrcp.f32 %v2345_v38  ;;  %v2351_v40 = vadd.f32 1.0, %v3639_v39  ;;  %v3641_v41 = vpop.eup %3640 }
 0x639   :  { %v3643_v42 = vpop.eup %3642 }
 0x63a   :  { %3646 = vrcp.f32 %v2351_v40  ;;  %v2358_v47 = vadd.f32 1.0, %v3643_v42 }
 0x63c   :  { %3648 = vrcp.f32 %v2358_v47 }
 0x645   :  { %v3645_v43 = vpop.eup %3644 }
 0x646   :  { %v2362_v45 = vmul.f32 %v3645_v43, %v3641_v41  ;;  %v4486_v41 = vld [vmem:[#allocation33_spill] sm:$0xff]  ;;  %v4487_v43 = vld [vmem:[#allocation31_spill] sm:$0xff] }
 0x647   :  { %v3647_v46 = vpop.eup %3646 }
 0x648   :  { %v2361_v29 = vmul.f32 %v3647_v46, %v4370_v57 }
 0x649   :  { %v3649_v50 = vpop.eup %3648 }
 0x64a   :  { %v2363_v7 = vadd.f32 %v2362_v45, %v2361_v29 }
 0x64c   :  { %3650 = vtanh.f32 %v2363_v7  ;;  %v4415_v12 = vsel %vm2376_vm12, %v2363_v7, %v4370_v57  ;;  %v3534_v57 = vld [vmem:[#allocation10 + $0x64] ss:$16 sps:$4 sm:$0xff]  }
 0x659   :  { %v3651_v52 = vpop.eup %3650 }
 0x65a   :  { %v2365_v54 = vmul.f32 %v3651_v52, %v3649_v50 }
 0x65c   :  { %v2366_v55 = vpack.c.bf16 %v2365_v54, %v2365_v54  ;;  %v4418_v17 = vsel %vm2376_vm12, %v2365_v54, %v4373_v10  ;;  %v3543_v10 = vld [vmem:[#allocation10 + $0x4c] ss:$16 sps:$4 sm:$0xff]  }
 0x65d   :  { %v2379_v56 = vpack.c.bf16 %v4418_v17, %v4418_v17 }
 0x65e   :  { %2368 = vst [vmem:[#allocation12 + $0x14] sm:$0xf] %v2366_v55 }
 0x65f   :  { %2605 = vmatmul.mubr.bf16.vlgmr.msra.gmra.mxu0 %v2379_v56  ;;  %2646 = vmatmul.mubr.bf16.vlgmr.msra.gmra.mxu1 %v2379_v56 }
 0x660   :  { %2920 = vmatprep.mubr.bf16.mxu0 %v4470_v23  ;;  %2961 = vmatprep.mubr.bf16.mxu1 %v4470_v23  ;;  %v3523_v23 = vld [vmem:[#allocation10 + $0xa8] ss:$16 sps:$4 sm:$0xff]  }
 0x661   :  { %2889 = vmatpush1.bf16.msra.mxu0 %v3508_v9  ;;  %2930 = vmatpush1.bf16.msra.mxu1 %v3511_v60 }
 0x662   :  { %2890 = vmatprep.subr.bf16.mxu0 %v3516_v61  ;;  %2931 = vmatprep.subr.bf16.mxu1 %v3519_v62 }
 0x665   :  { %2891 = vmatpush1.bf16.msra.mxu0 %v3514_v63  ;;  %2932 = vmatpush1.bf16.msra.mxu1 %v3517_v3 }
 0x666   :  { %2892 = vmatprep.subr.bf16.mxu0 %v3522_v4  ;;  %2933 = vmatprep.subr.bf16.mxu1 %v3525_v5 }
 0x669   :  { %2893 = vmatpush1.bf16.msra.mxu0 %v3520_v6  ;;  %2934 = vmatpush1.bf16.msra.mxu1 %v3523_v23 }
 0x66a   :  { %2894 = vmatprep.subr.bf16.mxu0 %v3528_v59  ;;  %2935 = vmatprep.subr.bf16.mxu1 %v3531_v51  ;;  %v4488_v51 = vld [vmem:[#allocation34_spill] sm:$0xff] }
 0x66d   :  { %2895 = vmatpush1.bf16.msra.mxu0 %v3526_v8  ;;  %2936 = vmatpush1.bf16.msra.mxu1 %v3529_v11 }
 0x66e   :  { %2896 = vmatprep.subr.bf16.mxu0 %v3534_v57  ;;  %2937 = vmatprep.subr.bf16.mxu1 %v3537_v34 }
 0x671   :  { %2897 = vmatpush1.bf16.msra.mxu0 %v3532_v30  ;;  %2938 = vmatpush1.bf16.msra.mxu1 %v3535_v31 }
 0x672   :  { %2898 = vmatprep.subr.bf16.mxu0 %v3540_v35  ;;  %2939 = vmatprep.subr.bf16.mxu1 %v3543_v10 }
 0x675   :  { %2899 = vmatpush1.bf16.msra.mxu0 %v3538_v49  ;;  %2940 = vmatpush1.bf16.msra.mxu1 %v3541_v13  ;;  %v4489_v13 = vld [vmem:[#allocation35_spill] sm:$0xff] }
 0x676   :  { %2900 = vmatprep.subr.bf16.mxu0 %v3546_v27  ;;  %2941 = vmatprep.subr.bf16.mxu1 %v3549_v22 }
 0x679   :  { %2901 = vmatpush1.bf16.msra.mxu0 %v3544_v15  ;;  %2942 = vmatpush1.bf16.msra.mxu1 %v3547_v33 }
 0x67a   :  { %2902 = vmatprep.subr.bf16.mxu0 %v3552_v28  ;;  %2943 = vmatprep.subr.bf16.mxu1 %v3555_v24 }
 0x67d   :  { %2903 = vmatpush1.bf16.msra.mxu0 %v3550_v26  ;;  %2944 = vmatpush1.bf16.msra.mxu1 %v3553_v14 }
 0x71f   :  { %v2606_v18 = vpop.f32.mrf.mxu0  ;;  %v2647_v20 = vpop.f32.mrf.mxu1 }
 0x720   :  { %v2654_v21 = vadd.f32 %v2606_v18, %v4484_v0  ;;  %v2656_v45 = vadd.f32 %v2647_v20, %v4487_v43 }
 0x721   :  { %v2608_v16 = vpop.f32.mrf.mxu0  ;;  %v2649_v19 = vpop.f32.mrf.mxu1 }
 0x722   :  { %v3310_v25 = vmul.f32 -1.442695, %v2654_v21  ;;  %v2655_v44 = vadd.f32 %v2608_v16, %v4485_v32  ;;  %v2657_v42 = vadd.f32 %v2649_v19, %v4486_v41 }
 0x723   :  { %v2610_v36 = vpop.f32.mrf.mxu0  ;;  %v2651_v37 = vpop.f32.mrf.mxu1 }
 0x724   :  { %3652 = vpow2.f32 %v3310_v25  ;;  %v3311_v38 = vmul.f32 -1.442695, %v2655_v44  ;;  %v3312_v46 = vmul.f32 -1.442695, %v2657_v42 }
 0x725   :  { %v2611_v39 = vpop.f32.mrf.mxu0  ;;  %v2652_v40 = vpop.f32.mrf.mxu1 }
 0x726   :  { %3654 = vpow2.f32 %v3311_v38 }
 0x727   :  { %3656 = vtanh.f32 %v2656_v45 }
 0x728   :  { %3658 = vpow2.f32 %v3312_v46 }
 0x731   :  { %v3653_v47 = vpop.eup %3652 }
 0x732   :  { %v2661_v48 = vadd.f32 1.0, %v3653_v47 }
 0x733   :  { %v3655_v29 = vpop.eup %3654 }
 0x734   :  { %3660 = vrcp.f32 %v2661_v48  ;;  %v2667_v7 = vadd.f32 1.0, %v3655_v29  ;;  %v3657_v50 = vpop.eup %3656 }
 0x735   :  { %v3659_v52 = vpop.eup %3658 }
 0x736   :  { %3662 = vrcp.f32 %v2667_v7  ;;  %v2674_v1 = vadd.f32 1.0, %v3659_v52 }
 0x738   :  { %3664 = vrcp.f32 %v2674_v1 }
 0x741   :  { %v3661_v54 = vpop.eup %3660 }
 0x742   :  { %v2678_v55 = vmul.f32 %v3661_v54, %v3657_v50 }
 0x743   :  { %v3663_v56 = vpop.eup %3662 }
 0x744   :  { %v2677_v9 = vmul.f32 %v3663_v56, %v4415_v12 }
 0x745   :  { %v3665_v62 = vpop.eup %3664 }
 0x746   :  { %v2679_v60 = vadd.f32 %v2678_v55, %v2677_v9 }
 0x748   :  { %3666 = vtanh.f32 %v2679_v60  ;;  %v2694_v61 = vsel %vm2692_vm13, %v2679_v60, %v4415_v12 }
 0x755   :  { %v3667_v63 = vpop.eup %3666 }
 0x756   :  { %v2681_v3 = vmul.f32 %v3667_v63, %v3665_v62 }
 0x758   :  { %v2682_v4 = vpack.c.bf16 %v2681_v3, %v2681_v3  ;;  %v2693_v5 = vsel %vm2692_vm13, %v2681_v3, %v4418_v17 }
 0x759   :  { %v2695_v6 = vpack.c.bf16 %v2693_v5, %v2693_v5 }
 0x75a   :  { %2684 = vst [vmem:[#allocation12 + $0x18] sm:$0xf] %v2682_v4 }
 0x75b   :  { %2921 = vmatmul.mubr.bf16.vlgmr.msra.gmra.mxu0 %v2695_v6  ;;  %2962 = vmatmul.mubr.bf16.vlgmr.msra.gmra.mxu1 %v2695_v6 }
 0x81b   :  { %v2922_v23 = vpop.f32.mrf.mxu0  ;;  %v2963_v59 = vpop.f32.mrf.mxu1 }
 0x81c   :  { %v2970_v8 = vadd.f32 %v2922_v23, %v4488_v51  ;;  %v2972_v27 = vadd.f32 %v2963_v59, %v4489_v13 }
 0x81d   :  { %v2924_v11 = vpop.f32.mrf.mxu0  ;;  %v2965_v57 = vpop.f32.mrf.mxu1 }
 0x81e   :  { %v3345_v30 = vmul.f32 -1.442695, %v2970_v8  ;;  %v2971_v31 = vadd.f32 %v2924_v11, %v4102_v53  ;;  %v2973_v17 = vadd.f32 %v2965_v57, %v4105_v2 }
 0x81f   :  { %v2926_v12 = vpop.f32.mrf.mxu0  ;;  %v2967_v34 = vpop.f32.mrf.mxu1 }
 0x820   :  { %3668 = vpow2.f32 %v3345_v30  ;;  %v3346_v35 = vmul.f32 -1.442695, %v2971_v31  ;;  %v3347_v22 = vmul.f32 -1.442695, %v2973_v17 }
 0x821   :  { %v2927_v10 = vpop.f32.mrf.mxu0  ;;  %v2968_v49 = vpop.f32.mrf.mxu1 }
 0x822   :  { %3670 = vpow2.f32 %v3346_v35 }
 0x823   :  { %3672 = vtanh.f32 %v2972_v27 }
 0x824   :  { %3674 = vpow2.f32 %v3347_v22 }
 0x82d   :  { %v3669_v15 = vpop.eup %3668 }
 0x82e   :  { %v2977_v33 = vadd.f32 1.0, %v3669_v15 }
 0x82f   :  { %v3671_v28 = vpop.eup %3670 }
 0x830   :  { %3676 = vrcp.f32 %v2977_v33  ;;  %v2983_v24 = vadd.f32 1.0, %v3671_v28  ;;  %v3673_v53 = vpop.eup %3672 }
 0x831   :  { %v3675_v26 = vpop.eup %3674 }
 0x832   :  { %3678 = vrcp.f32 %v2983_v24  ;;  %v2990_v0 = vadd.f32 1.0, %v3675_v26 }
 0x834   :  { %3680 = vrcp.f32 %v2990_v0 }
 0x83d   :  { %v3677_v14 = vpop.eup %3676 }
 0x83e   :  { %v2994_v18 = vmul.f32 %v3677_v14, %v3673_v53 }
 0x83f   :  { %v3679_v20 = vpop.eup %3678 }
 0x840   :  { %v2993_v21 = vmul.f32 %v3679_v20, %v2694_v61 }
 0x841   :  { %v3681_v2 = vpop.eup %3680 }
 0x842   :  { %v2995_v16 = vadd.f32 %v2994_v18, %v2993_v21 }
 0x844   :  { %3682 = vtanh.f32 %v2995_v16 }
 0x851   :  { %v3683_v19 = vpop.eup %3682 }
 0x852   :  { %v2997_v25 = vmul.f32 %v3683_v19, %v3681_v2 }
 0x854   :  { %v2998_v32 = vpack.c.bf16 %v2997_v25, %v2997_v25 }
 0x856   :  { %3000 = vst [vmem:[#allocation12 + $0x1c] sm:$0xf] %v2998_v32 }
 0x857   :  { %3775 = shalt.err (!%p3772_p10)
}
 0x858   :  { %3024 = dma.vmem_to_hbm [thread:$0]  %s3019_s25, 512, %s4448_s7, [#allocation6], %s3794_s9, %s3794_s9, %s3795_s10  }
 0x859   :  { %3790 = dma.done.wait [#allocation6], 512  }
 0x85a   :  { %3791 = vsyncadd [#allocation6], 4294966784 }
 0x85b   :  { %3028 = vsyncpa [#allocation5], 1 }
 0x85c   :  { %3029 = vsyncpa [#allocation8], 1 }
 0x85d   :  { %3030 = vsyncpa [#allocation11], 1 }
 0x85e   :  { %3031 = vsyncpa [#allocation6], 1 }

</bundles_post_ra>
